<compile_context>
chip_gen: v6e
topology: v6e:2x2x1
jax: 0.10.0
libtpu: 0.0.40
codegen_flags: <defaults>
</compile_context>

<pallas_src>
import math

import jax
import jax.numpy as jnp
from jax import lax
from jax.experimental import pallas as pl
from jax.experimental.pallas import tpu as pltpu


# ----------------------------- helpers (used in kernel AND reference) ---------

def _sigmoid(v):
    return 1.0 / (1.0 + jnp.exp(-v))


def _softplus(v):
    # numerically stable softplus: max(v, 0) + log(1 + exp(-|v|))
    return jnp.maximum(v, 0.0) + jnp.log(1.0 + jnp.exp(-jnp.abs(v)))


# ----------------------------- Mamba block kernel -----------------------------

def make_mamba_kernel(L, D, d_inner, d_state, d_conv, dt_rank, Lc, apply_ln, ln_eps):
    R = dt_rank + 2 * d_state          # fused x_proj width, columns ordered [dt | B | C]
    n_chunks = L // Lc
    scan_unroll = True if Lc <= 16 else 8

    def kernel(hs_ref, w_in_x_ref, w_in_z_ref, conv_w_ref, conv_b_ref,
               w_x_ref, w_dt_ref, b_dt_ref, a_log_ref, d_skip_ref, w_out_ref,
               *rest):
        if apply_ln:
            (gamma_ref, beta_ref, out_ref,
             da_scr, dbu_scr, c_scr, y_scr) = rest
        else:
            (out_ref,
             da_scr, dbu_scr, c_scr, y_scr) = rest

        hs = hs_ref[0]                                             # (L, D) f32
        hs_b = hs.astype(jnp.bfloat16)

        # ---------------- in_proj (bf16 operands, f32 accumulation) ----------------
        x = jnp.dot(hs_b, w_in_x_ref[...], preferred_element_type=jnp.float32)   # (L, d_inner)
        z = jnp.dot(hs_b, w_in_z_ref[...], preferred_element_type=jnp.float32)   # (L, d_inner)

        # ---------------- causal depthwise conv1d + SiLU ----------------
        row = lax.broadcasted_iota(jnp.int32, (L, d_inner), 0)
        conv = jnp.zeros((L, d_inner), jnp.float32)
        for k in range(d_conv):                                    # d_conv is tiny & static
            s = d_conv - 1 - k
            xs = x if s == 0 else jnp.where(row >= s, pltpu.roll(x, shift=s, axis=0), 0.0)
            conv = conv + xs * conv_w_ref[k:k + 1, :]
        conv = conv + conv_b_ref[...]
        u = conv * _sigmoid(conv)                                  # (L, d_inner)

        # ---------------- fused x_proj: one MXU push for [dt | B | C] ----------------
        xdbc = jnp.dot(u.astype(jnp.bfloat16), w_x_ref[...],
                       preferred_element_type=jnp.float32)         # (L, R)
        dt_in = xdbc[:, :dt_rank]                                  # offset-0 lane slice

        # ---------------- dt_proj + stable softplus ----------------
        dt = jnp.dot(dt_in, w_dt_ref[...],
                     preferred_element_type=jnp.float32) + b_dt_ref[...]
        dt = _softplus(dt)                                         # (L, d_inner)
        g = dt * u                                                 # (L, d_inner)

        A_T = -jnp.exp(a_log_ref[...])                             # (d_state, d_inner)

        # selection masks to turn each (1, R) row [dt|B|C] into (d_state, 1) B / C columns
        lane = lax.broadcasted_iota(jnp.int32, (d_state, R), 1)
        subl = lax.broadcasted_iota(jnp.int32, (d_state, R), 0)
        b_sel = (lane == subl + dt_rank)[None]                     # (1, d_state, R)
        c_sel = (lane == subl + dt_rank + d_state)[None]           # (1, d_state, R)

        h = jnp.zeros((d_state, d_inner), jnp.float32)
        for ci in range(n_chunks):                                 # static chunk loop
            t0 = ci * Lc

            # -- fully vectorized per-chunk precompute (no per-timestep loop):
            #    dA = exp(dt*A), dB*u and C columns are staged in VMEM so the serial
            #    recurrence below is just mul-add + masked reduce per step. --
            dt_c = dt[t0:t0 + Lc]                                  # (Lc, d_inner)
            g_c = g[t0:t0 + Lc]                                    # (Lc, d_inner)
            bc = jnp.broadcast_to(xdbc[t0:t0 + Lc][:, None, :], (Lc, d_state, R))
            b_col = jnp.sum(jnp.where(b_sel, bc, 0.0), axis=2, keepdims=True)  # (Lc, d_state, 1)
            c_col = jnp.sum(jnp.where(c_sel, bc, 0.0), axis=2, keepdims=True)  # (Lc, d_state, 1)

            da_scr[...] = jnp.exp(dt_c[:, None, :] * A_T[None])   # (Lc, d_state, d_inner)
            dbu_scr[...] = b_col * g_c[:, None, :]                 # (Lc, d_state, d_inner)
            c_scr[...] = c_col                                     # (Lc, d_state, 1)

            # -- serial selective scan over the chunk: mul-add + masked reduce --
            def scan_body(tl, hh, t0=t0):
                hh = da_scr[tl] * hh + dbu_scr[tl]                 # (d_state, d_inner)
                y_scr[pl.ds(t0 + tl, 1), :] = jnp.sum(hh * c_scr[tl], axis=0, keepdims=True)
                return hh

            h = lax.fori_loop(0, Lc, scan_body, h, unroll=scan_unroll)

        # ---------------- D skip, SiLU(z) gate, out_proj ----------------
        y = y_scr[...] + u * d_skip_ref[...]                       # (L, d_inner)
        y = y * (z * _sigmoid(z))
        out = jnp.dot(y.astype(jnp.bfloat16), w_out_ref[...],
                      preferred_element_type=jnp.float32)          # (L, D)

        if apply_ln:                                               # fused final LayerNorm
            mu = jnp.mean(out, axis=-1, keepdims=True)
            xc = out - mu
            var = jnp.mean(xc * xc, axis=-1, keepdims=True)
            out = xc * lax.rsqrt(var + ln_eps) * gamma_ref[...] + beta_ref[...]

        out_ref[0] = out.astype(out_ref.dtype)

    return kernel


def mamba_block(hs, p, *, d_state, d_conv, dt_rank, scan_chunk=None, ln=None, ln_eps=1e-5):
    B, L, D = hs.shape
    d_inner = p["w_in_x"].shape[1]
    Lc = L if scan_chunk is None else scan_chunk
    assert L % Lc == 0, "scan_chunk must divide L"
    apply_ln = ln is not None

    kernel = make_mamba_kernel(L, D, d_inner, d_state, d_conv, dt_rank, Lc, apply_ln, ln_eps)

    weights = [p["w_in_x"], p["w_in_z"], p["conv_w"], p["conv_b"], p["w_x_all"],
               p["w_dt"], p["b_dt"], p["a_log_t"], p["d_skip"], p["w_out"]]
    if apply_ln:
        weights += [ln["gamma"], ln["beta"]]

    def full2d(a):
        return pl.BlockSpec(a.shape, lambda b: (0, 0))

    return pl.pallas_call(
        kernel,
        out_shape=jax.ShapeDtypeStruct((B, L, D), jnp.float32),
        grid=(B,),
        in_specs=[pl.BlockSpec((1, L, D), lambda b: (b, 0, 0))] + [full2d(w) for w in weights],
        out_specs=pl.BlockSpec((1, L, D), lambda b: (b, 0, 0)),
        scratch_shapes=[
            pltpu.VMEM((Lc, d_state, d_inner), jnp.float32),   # dA  (per scan chunk)
            pltpu.VMEM((Lc, d_state, d_inner), jnp.float32),   # dB*u (per scan chunk)
            pltpu.VMEM((Lc, d_state, 1), jnp.float32),         # C columns (per scan chunk)
            pltpu.VMEM((L, d_inner), jnp.float32),             # y (scan output)
        ],
        compiler_params=pltpu.CompilerParams(
            dimension_semantics=("parallel",),                 # batch rows are independent
            vmem_limit_bytes=32 * 1024 * 1024),
    )(hs, *weights)


# ----------------------------- full model forward -----------------------------

def model_forward(hs, layer_params, ln_params, *, d_state, d_conv, dt_rank, ln_eps,
                  scan_chunk=None):
    # Dropout(embd_pdrop) is identity at inference.
    n = len(layer_params)
    assert n >= 1
    for i, p in enumerate(layer_params):
        is_last = i == n - 1
        hs = mamba_block(hs, p, d_state=d_state, d_conv=d_conv, dt_rank=dt_rank,
                         scan_chunk=scan_chunk,
                         ln=ln_params if is_last else None, ln_eps=ln_eps)
    return hs


# ----------------------------- parameter init (deterministic, synthetic) ------

def init_params(key, n_layer, D, d_inner, d_state, d_conv, dt_rank):
    std = 0.02
    layers = []
    for _ in range(n_layer):
        key, k0, k1, k2, k3, k4 = jax.random.split(key, 6)
        w_in = jax.random.normal(k0, (2 * d_inner, D), jnp.float32) * std          # nn.Linear
        conv_w = (jax.random.uniform(k1, (d_inner, d_conv), jnp.float32) - 0.5) \
                 * 2.0 / math.sqrt(d_conv)                                          # nn.Conv1d-ish
        w_x = jax.random.normal(k2, (dt_rank + 2 * d_state, d_inner), jnp.float32) * std
        w_dt = jax.random.normal(k3, (d_inner, dt_rank), jnp.float32) * std
        w_out = jax.random.normal(k4, (D, d_inner), jnp.float32) * std
        # S4D-real init, stored pre-transposed (d_state, d_inner) so the scan keeps
        # d_inner on the 128-lane axis.
        a_log_t = jnp.log(jnp.broadcast_to(
            jnp.arange(1, d_state + 1, dtype=jnp.float32)[:, None], (d_state, d_inner)))
        layers.append(dict(
            w_in_x=w_in[:d_inner].T.astype(jnp.bfloat16),
            w_in_z=w_in[d_inner:].T.astype(jnp.bfloat16),
            conv_w=conv_w.T, conv_b=jnp.zeros((1, d_inner), jnp.float32),
            w_x_all=w_x.T.astype(jnp.bfloat16),          # (d_inner, R), columns [dt | B | C]
            w_dt=w_dt.T, b_dt=jnp.zeros((1, d_inner), jnp.float32),
            a_log_t=a_log_t, d_skip=jnp.ones((1, d_inner), jnp.float32),
            w_out=w_out.T.astype(jnp.bfloat16)))
    ln = dict(gamma=jnp.ones((1, D), jnp.float32), beta=jnp.zeros((1, D), jnp.float32))
    return layers, ln


# ----------------------------- pure-JAX reference ------------------------------

def _bf16_mm(a, w):
    # bf16 operands, f32 accumulation -- matches the in-kernel MXU matmuls.
    return jnp.einsum("...i,ij->...j", a.astype(jnp.bfloat16), w,
                      preferred_element_type=jnp.float32,
                      precision=lax.Precision.HIGHEST)


def ref_mamba_block(hs, p, *, d_state, d_conv, dt_rank):
    B, L, D = hs.shape
    x = _bf16_mm(hs, p["w_in_x"])
    z = _bf16_mm(hs, p["w_in_z"])
    conv = jnp.zeros_like(x)
    for k in range(d_conv):
        s = d_conv - 1 - k
        xs = jnp.pad(x, ((0, 0), (s, 0), (0, 0)))[:, :L, :]
        conv = conv + xs * p["conv_w"][k][None, None, :]
    conv = conv + p["conv_b"][None]
    u = conv * _sigmoid(conv)
    xdbc = _bf16_mm(u, p["w_x_all"])
    dt_in = xdbc[..., :dt_rank]
    Bm = xdbc[..., dt_rank:dt_rank + d_state]
    Cm = xdbc[..., dt_rank + d_state:]
    dt = _softplus(jnp.einsum("bli,ij->blj", dt_in, p["w_dt"],
                              preferred_element_type=jnp.float32,
                              precision=lax.Precision.HIGHEST) + p["b_dt"][None])
    A_T = -jnp.exp(p["a_log_t"])                         # (d_state, d_inner)
    d_inner = A_T.shape[1]
    h = jnp.zeros((B, d_state, d_inner), jnp.float32)
    ys = []
    for t in range(L):
        dA = jnp.exp(dt[:, t, None, :] * A_T[None])                           # (B, n, d)
        dBu = (dt[:, t, :] * u[:, t, :])[:, None, :] * Bm[:, t, :, None]      # (B, n, d)
        h = dA * h + dBu
        ys.append(jnp.einsum("bnd,bn->bd", h, Cm[:, t]))
    y = jnp.stack(ys, axis=1) + u * p["d_skip"][None]
    y = y * (z * _sigmoid(z))
    return _bf16_mm(y, p["w_out"])


def ref_forward(hs, layer_params, ln_params, *, d_state, d_conv, dt_rank, ln_eps):
    for p in layer_params:
        hs = ref_mamba_block(hs, p, d_state=d_state, d_conv=d_conv, dt_rank=dt_rank)
    mu = hs.mean(-1, keepdims=True)
    var = ((hs - mu) ** 2).mean(-1, keepdims=True)
    return (hs - mu) * lax.rsqrt(var + ln_eps) * ln_params["gamma"][0] + ln_params["beta"][0]


# ----------------------------- main --------------------------------------------

if __name__ == "__main__":
    # small config consistent with the module: n_embd=32, n_layer=2, token_mixer='conv'
    B, L, D = 2, 8, 32
    n_layer = 2
    expand, d_state, d_conv = 2, 8, 4
    d_inner = expand * D
    dt_rank = math.ceil(D / 16)
    ln_eps = 1e-5

    key = jax.random.PRNGKey(0)
    key, k_in, k_par = jax.random.split(key, 3)
    hidden_states = jax.random.normal(k_in, (B, L, D), jnp.float32)
    layer_params, ln_params = init_params(k_par, n_layer, D, d_inner, d_state, d_conv, dt_rank)

    out = model_forward(hidden_states, layer_params, ln_params,
                        d_state=d_state, d_conv=d_conv, dt_rank=dt_rank, ln_eps=ln_eps)
    out = jax.block_until_ready(out)

    ref = ref_forward(hidden_states, layer_params, ln_params,
                      d_state=d_state, d_conv=d_conv, dt_rank=dt_rank, ln_eps=ln_eps)
    assert out.shape == (B, L, D)
    assert bool(jnp.allclose(out, ref, atol=2e-3, rtol=2e-3)), "mismatch vs JAX reference"

    print("KERNEL_OK")
</pallas_src>

<mosaic_0001>
module attributes {stable_mosaic.version = 11 : i64} {
  func.func @kernel(%arg0: i32, %arg1: memref<1x8x32xf32, #tpu.memory_space<vmem>>, %arg2: memref<32x64xbf16, #tpu.memory_space<vmem>>, %arg3: memref<32x64xbf16, #tpu.memory_space<vmem>>, %arg4: memref<4x64xf32, #tpu.memory_space<vmem>>, %arg5: memref<1x64xf32, #tpu.memory_space<vmem>>, %arg6: memref<64x18xbf16, #tpu.memory_space<vmem>>, %arg7: memref<2x64xf32, #tpu.memory_space<vmem>>, %arg8: memref<1x64xf32, #tpu.memory_space<vmem>>, %arg9: memref<8x64xf32, #tpu.memory_space<vmem>>, %arg10: memref<1x64xf32, #tpu.memory_space<vmem>>, %arg11: memref<64x32xbf16, #tpu.memory_space<vmem>>, %arg12: memref<1x8x32xf32, #tpu.memory_space<vmem>>, %arg13: memref<8x8x64xf32, #tpu.memory_space<vmem>>, %arg14: memref<8x8x64xf32, #tpu.memory_space<vmem>>, %arg15: memref<8x8x1xf32, #tpu.memory_space<vmem>>, %arg16: memref<8x64xf32, #tpu.memory_space<vmem>>) attributes {dimension_semantics = [#tpu.dimension_semantics<parallel>], iteration_bounds = array<i64: 2>, scalar_prefetch = 0 : i64, scratch_operands = 4 : i64, tpu.core_type = #tpu.core_type<tc>, window_params = [{transform_indices = @transform_0, window_bounds = array<i64: 1, 8, 32>}, {pipeline_mode = #tpu.pipeline_mode<synchronous>, transform_indices = @transform_1, window_bounds = array<i64: 32, 64>}, {pipeline_mode = #tpu.pipeline_mode<synchronous>, transform_indices = @transform_2, window_bounds = array<i64: 32, 64>}, {pipeline_mode = #tpu.pipeline_mode<synchronous>, transform_indices = @transform_3, window_bounds = array<i64: 4, 64>}, {pipeline_mode = #tpu.pipeline_mode<synchronous>, transform_indices = @transform_4, window_bounds = array<i64: 1, 64>}, {pipeline_mode = #tpu.pipeline_mode<synchronous>, transform_indices = @transform_5, window_bounds = array<i64: 64, 18>}, {pipeline_mode = #tpu.pipeline_mode<synchronous>, transform_indices = @transform_6, window_bounds = array<i64: 2, 64>}, {pipeline_mode = #tpu.pipeline_mode<synchronous>, transform_indices = @transform_7, window_bounds = array<i64: 1, 64>}, {pipeline_mode = #tpu.pipeline_mode<synchronous>, transform_indices = @transform_8, window_bounds = array<i64: 8, 64>}, {pipeline_mode = #tpu.pipeline_mode<synchronous>, transform_indices = @transform_9, window_bounds = array<i64: 1, 64>}, {pipeline_mode = #tpu.pipeline_mode<synchronous>, transform_indices = @transform_10, window_bounds = array<i64: 64, 32>}, {transform_indices = @transform_11, window_bounds = array<i64: 1, 8, 32>}]} {
    %c0 = arith.constant 0 : index
    %c0_0 = arith.constant 0 : index
    %c0_1 = arith.constant 0 : index
    %0 = vector.load %arg1[%c0, %c0_0, %c0_1] : memref<1x8x32xf32, #tpu.memory_space<vmem>>, vector<1x8x32xf32>
    %1 = vector.shape_cast %0 : vector<1x8x32xf32> to vector<8x32xf32>
    %2 = arith.truncf %1 : vector<8x32xf32> to vector<8x32xbf16>
    %c0_2 = arith.constant 0 : index
    %c0_3 = arith.constant 0 : index
    %3 = vector.load %arg2[%c0_2, %c0_3] : memref<32x64xbf16, #tpu.memory_space<vmem>>, vector<32x64xbf16>
    %cst = arith.constant dense<0.000000e+00> : vector<8x64xf32>
    %4 = tpu.matmul %2, %3, %cst {dimension_numbers = #tpu.dot_dimension_numbers<[1], [0], [0], [1], [0, 0, 1, 1], [], []>} : vector<8x32xbf16>, vector<32x64xbf16>, vector<8x64xf32> -> vector<8x64xf32>
    %c0_4 = arith.constant 0 : index
    %c0_5 = arith.constant 0 : index
    %5 = vector.load %arg3[%c0_4, %c0_5] : memref<32x64xbf16, #tpu.memory_space<vmem>>, vector<32x64xbf16>
    %cst_6 = arith.constant dense<0.000000e+00> : vector<8x64xf32>
    %6 = tpu.matmul %2, %5, %cst_6 {dimension_numbers = #tpu.dot_dimension_numbers<[1], [0], [0], [1], [0, 0, 1, 1], [], []>} : vector<8x32xbf16>, vector<32x64xbf16>, vector<8x64xf32> -> vector<8x64xf32>
    %7 = tpu.iota {dimensions = array<i32: 0>} : vector<8x64xi32>
    %cst_7 = arith.constant 0.000000e+00 : f32
    %8 = vector.broadcast %cst_7 : f32 to vector<8x64xf32>
    %c3_i32 = arith.constant 3 : i32
    %9 = vector.broadcast %c3_i32 : i32 to vector<8x64xi32>
    %10 = arith.cmpi sge, %7, %9 : vector<8x64xi32>
    %c3_i32_8 = arith.constant 3 : i32
    %11 = tpu.dynamic_rotate %4 by %c3_i32_8 dim 0 : vector<8x64xf32>, i32 -> vector<8x64xf32>
    %cst_9 = arith.constant 0.000000e+00 : f32
    %12 = vector.broadcast %cst_9 : f32 to vector<8x64xf32>
    %13 = arith.select %10, %11, %12 : vector<8x64xi1>, vector<8x64xf32>
    %c0_10 = arith.constant 0 : index
    %c0_11 = arith.constant 0 : index
    %14 = vector.load %arg4[%c0_10, %c0_11] : memref<4x64xf32, #tpu.memory_space<vmem>>, vector<1x64xf32>
    %15 = vector.broadcast %14 : vector<1x64xf32> to vector<8x64xf32>
    %16 = arith.mulf %13, %15 : vector<8x64xf32>
    %17 = arith.addf %8, %16 : vector<8x64xf32>
    %c2_i32 = arith.constant 2 : i32
    %18 = vector.broadcast %c2_i32 : i32 to vector<8x64xi32>
    %19 = arith.cmpi sge, %7, %18 : vector<8x64xi32>
    %c2_i32_12 = arith.constant 2 : i32
    %20 = tpu.dynamic_rotate %4 by %c2_i32_12 dim 0 : vector<8x64xf32>, i32 -> vector<8x64xf32>
    %cst_13 = arith.constant 0.000000e+00 : f32
    %21 = vector.broadcast %cst_13 : f32 to vector<8x64xf32>
    %22 = arith.select %19, %20, %21 : vector<8x64xi1>, vector<8x64xf32>
    %c1 = arith.constant 1 : index
    %c0_14 = arith.constant 0 : index
    %23 = vector.load %arg4[%c1, %c0_14] : memref<4x64xf32, #tpu.memory_space<vmem>>, vector<1x64xf32>
    %24 = vector.broadcast %23 : vector<1x64xf32> to vector<8x64xf32>
    %25 = arith.mulf %22, %24 : vector<8x64xf32>
    %26 = arith.addf %17, %25 : vector<8x64xf32>
    %c1_i32 = arith.constant 1 : i32
    %27 = vector.broadcast %c1_i32 : i32 to vector<8x64xi32>
    %28 = arith.cmpi sge, %7, %27 : vector<8x64xi32>
    %c1_i32_15 = arith.constant 1 : i32
    %29 = tpu.dynamic_rotate %4 by %c1_i32_15 dim 0 : vector<8x64xf32>, i32 -> vector<8x64xf32>
    %cst_16 = arith.constant 0.000000e+00 : f32
    %30 = vector.broadcast %cst_16 : f32 to vector<8x64xf32>
    %31 = arith.select %28, %29, %30 : vector<8x64xi1>, vector<8x64xf32>
    %c2 = arith.constant 2 : index
    %c0_17 = arith.constant 0 : index
    %32 = vector.load %arg4[%c2, %c0_17] : memref<4x64xf32, #tpu.memory_space<vmem>>, vector<1x64xf32>
    %33 = vector.broadcast %32 : vector<1x64xf32> to vector<8x64xf32>
    %34 = arith.mulf %31, %33 : vector<8x64xf32>
    %35 = arith.addf %26, %34 : vector<8x64xf32>
    %c3 = arith.constant 3 : index
    %c0_18 = arith.constant 0 : index
    %36 = vector.load %arg4[%c3, %c0_18] : memref<4x64xf32, #tpu.memory_space<vmem>>, vector<1x64xf32>
    %37 = vector.broadcast %36 : vector<1x64xf32> to vector<8x64xf32>
    %38 = arith.mulf %4, %37 : vector<8x64xf32>
    %39 = arith.addf %35, %38 : vector<8x64xf32>
    %c0_19 = arith.constant 0 : index
    %c0_20 = arith.constant 0 : index
    %40 = vector.load %arg5[%c0_19, %c0_20] : memref<1x64xf32, #tpu.memory_space<vmem>>, vector<1x64xf32>
    %41 = vector.broadcast %40 : vector<1x64xf32> to vector<8x64xf32>
    %42 = arith.addf %39, %41 : vector<8x64xf32>
    %cst_21 = arith.constant 0.000000e+00 : f32
    %43 = vector.broadcast %cst_21 : f32 to vector<8x64xf32>
    %44 = arith.subf %43, %42 : vector<8x64xf32>
    %45 = math.exp %44 : vector<8x64xf32>
    %cst_22 = arith.constant 1.000000e+00 : f32
    %46 = vector.broadcast %cst_22 : f32 to vector<8x64xf32>
    %47 = arith.addf %46, %45 : vector<8x64xf32>
    %cst_23 = arith.constant 1.000000e+00 : f32
    %48 = vector.broadcast %cst_23 : f32 to vector<8x64xf32>
    %49 = arith.divf %48, %47 : vector<8x64xf32>
    %50 = arith.mulf %42, %49 : vector<8x64xf32>
    %51 = arith.truncf %50 : vector<8x64xf32> to vector<8x64xbf16>
    %c0_24 = arith.constant 0 : index
    %c0_25 = arith.constant 0 : index
    %52 = vector.load %arg6[%c0_24, %c0_25] : memref<64x18xbf16, #tpu.memory_space<vmem>>, vector<64x18xbf16>
    %cst_26 = arith.constant dense<0.000000e+00> : vector<8x18xf32>
    %53 = tpu.matmul %51, %52, %cst_26 {dimension_numbers = #tpu.dot_dimension_numbers<[1], [0], [0], [1], [0, 0, 1, 1], [], []>} : vector<8x64xbf16>, vector<64x18xbf16>, vector<8x18xf32> -> vector<8x18xf32>
    %54 = vector.extract_strided_slice %53 {offsets = [0, 0], sizes = [8, 2], strides = [1, 1]} : vector<8x18xf32> to vector<8x2xf32>
    %c0_27 = arith.constant 0 : index
    %c0_28 = arith.constant 0 : index
    %55 = vector.load %arg7[%c0_27, %c0_28] : memref<2x64xf32, #tpu.memory_space<vmem>>, vector<2x64xf32>
    %cst_29 = arith.constant dense<0.000000e+00> : vector<8x64xf32>
    %56 = tpu.matmul %54, %55, %cst_29 {dimension_numbers = #tpu.dot_dimension_numbers<[1], [0], [0], [1], [0, 0, 1, 1], [], []>} : vector<8x2xf32>, vector<2x64xf32>, vector<8x64xf32> -> vector<8x64xf32>
    %c0_30 = arith.constant 0 : index
    %c0_31 = arith.constant 0 : index
    %57 = vector.load %arg8[%c0_30, %c0_31] : memref<1x64xf32, #tpu.memory_space<vmem>>, vector<1x64xf32>
    %58 = vector.broadcast %57 : vector<1x64xf32> to vector<8x64xf32>
    %59 = arith.addf %56, %58 : vector<8x64xf32>
    %cst_32 = arith.constant 0.000000e+00 : f32
    %60 = vector.broadcast %cst_32 : f32 to vector<8x64xf32>
    %61 = arith.maximumf %59, %60 : vector<8x64xf32>
    %62 = math.absf %59 : vector<8x64xf32>
    %cst_33 = arith.constant 0.000000e+00 : f32
    %63 = vector.broadcast %cst_33 : f32 to vector<8x64xf32>
    %64 = arith.subf %63, %62 : vector<8x64xf32>
    %65 = math.exp %64 : vector<8x64xf32>
    %cst_34 = arith.constant 1.000000e+00 : f32
    %66 = vector.broadcast %cst_34 : f32 to vector<8x64xf32>
    %67 = arith.addf %66, %65 : vector<8x64xf32>
    %68 = math.log %67 : vector<8x64xf32>
    %69 = arith.addf %61, %68 : vector<8x64xf32>
    %70 = arith.mulf %69, %50 : vector<8x64xf32>
    %c0_35 = arith.constant 0 : index
    %c0_36 = arith.constant 0 : index
    %71 = vector.load %arg9[%c0_35, %c0_36] : memref<8x64xf32, #tpu.memory_space<vmem>>, vector<8x64xf32>
    %72 = math.exp %71 : vector<8x64xf32>
    %cst_37 = arith.constant 0.000000e+00 : f32
    %73 = vector.broadcast %cst_37 : f32 to vector<8x64xf32>
    %74 = arith.subf %73, %72 : vector<8x64xf32>
    %75 = tpu.iota {dimensions = array<i32: 1>} : vector<8x18xi32>
    %76 = tpu.iota {dimensions = array<i32: 0>} : vector<8x18xi32>
    %c2_i32_38 = arith.constant 2 : i32
    %77 = vector.broadcast %c2_i32_38 : i32 to vector<8x18xi32>
    %78 = arith.addi %76, %77 : vector<8x18xi32>
    %79 = arith.cmpi eq, %75, %78 : vector<8x18xi32>
    %80 = vector.shape_cast %79 : vector<8x18xi1> to vector<1x8x18xi1>
    %c2_i32_39 = arith.constant 2 : i32
    %81 = vector.broadcast %c2_i32_39 : i32 to vector<8x18xi32>
    %82 = arith.addi %76, %81 : vector<8x18xi32>
    %c8_i32 = arith.constant 8 : i32
    %83 = vector.broadcast %c8_i32 : i32 to vector<8x18xi32>
    %84 = arith.addi %82, %83 : vector<8x18xi32>
    %85 = arith.cmpi eq, %75, %84 : vector<8x18xi32>
    %86 = vector.shape_cast %85 : vector<8x18xi1> to vector<1x8x18xi1>
    %cst_40 = arith.constant 0.000000e+00 : f32
    %87 = vector.broadcast %cst_40 : f32 to vector<8x64xf32>
    %88 = vector.shape_cast %53 : vector<8x18xf32> to vector<8x1x18xf32>
    %89 = vector.shape_cast %88 : vector<8x1x18xf32> to vector<8x1x18xf32>
    %90 = vector.broadcast %89 : vector<8x1x18xf32> to vector<8x8x18xf32>
    %cst_41 = arith.constant 0.000000e+00 : f32
    %91 = vector.shape_cast %80 : vector<1x8x18xi1> to vector<1x8x18xi1>
    %92 = vector.broadcast %91 : vector<1x8x18xi1> to vector<8x8x18xi1>
    %93 = vector.broadcast %cst_41 : f32 to vector<8x8x18xf32>
    %94 = arith.select %92, %90, %93 : vector<8x8x18xi1>, vector<8x8x18xf32>
    %cst_42 = arith.constant dense<0.000000e+00> : vector<8x8xf32>
    %95 = vector.multi_reduction <add>, %94, %cst_42 [2] : vector<8x8x18xf32> to vector<8x8xf32>
    %96 = vector.shape_cast %95 : vector<8x8xf32> to vector<8x8x1xf32>
    %cst_43 = arith.constant 0.000000e+00 : f32
    %97 = vector.shape_cast %86 : vector<1x8x18xi1> to vector<1x8x18xi1>
    %98 = vector.broadcast %97 : vector<1x8x18xi1> to vector<8x8x18xi1>
    %99 = vector.broadcast %cst_43 : f32 to vector<8x8x18xf32>
    %100 = arith.select %98, %90, %99 : vector<8x8x18xi1>, vector<8x8x18xf32>
    %cst_44 = arith.constant dense<0.000000e+00> : vector<8x8xf32>
    %101 = vector.multi_reduction <add>, %100, %cst_44 [2] : vector<8x8x18xf32> to vector<8x8xf32>
    %102 = vector.shape_cast %101 : vector<8x8xf32> to vector<8x8x1xf32>
    %103 = vector.shape_cast %69 : vector<8x64xf32> to vector<8x1x64xf32>
    %104 = vector.shape_cast %74 : vector<8x64xf32> to vector<1x8x64xf32>
    %105 = vector.broadcast %103 : vector<8x1x64xf32> to vector<8x8x64xf32>
    %106 = vector.broadcast %104 : vector<1x8x64xf32> to vector<8x8x64xf32>
    %107 = arith.mulf %105, %106 : vector<8x8x64xf32>
    %108 = math.exp %107 : vector<8x8x64xf32>
    %c0_45 = arith.constant 0 : index
    %c0_46 = arith.constant 0 : index
    %c0_47 = arith.constant 0 : index
    %109 = vector.load %arg13[%c0_45, %c0_46, %c0_47] : memref<8x8x64xf32, #tpu.memory_space<vmem>>, vector<8x8x64xf32>
    tpu.vector_store %arg13[%c0_45, %c0_46, %c0_47], %108 {strides = array<i32>} : memref<8x8x64xf32, #tpu.memory_space<vmem>>, vector<8x8x64xf32>,
    %110 = vector.shape_cast %70 : vector<8x64xf32> to vector<8x1x64xf32>
    %111 = vector.broadcast %96 : vector<8x8x1xf32> to vector<8x8x64xf32>
    %112 = vector.broadcast %110 : vector<8x1x64xf32> to vector<8x8x64xf32>
    %113 = arith.mulf %111, %112 : vector<8x8x64xf32>
    %c0_48 = arith.constant 0 : index
    %c0_49 = arith.constant 0 : index
    %c0_50 = arith.constant 0 : index
    %114 = vector.load %arg14[%c0_48, %c0_49, %c0_50] : memref<8x8x64xf32, #tpu.memory_space<vmem>>, vector<8x8x64xf32>
    tpu.vector_store %arg14[%c0_48, %c0_49, %c0_50], %113 {strides = array<i32>} : memref<8x8x64xf32, #tpu.memory_space<vmem>>, vector<8x8x64xf32>,
    %c0_51 = arith.constant 0 : index
    %c0_52 = arith.constant 0 : index
    %c0_53 = arith.constant 0 : index
    %115 = vector.load %arg15[%c0_51, %c0_52, %c0_53] : memref<8x8x1xf32, #tpu.memory_space<vmem>>, vector<8x8x1xf32>
    tpu.vector_store %arg15[%c0_51, %c0_52, %c0_53], %102 {strides = array<i32>} : memref<8x8x1xf32, #tpu.memory_space<vmem>>, vector<8x8x1xf32>,
    %c0_i32 = arith.constant 0 : i32
    %116 = arith.index_cast %c0_i32 : i32 to index
    %c0_54 = arith.constant 0 : index
    %c0_55 = arith.constant 0 : index
    %117 = vector.load %arg13[%116, %c0_54, %c0_55] : memref<8x8x64xf32, #tpu.memory_space<vmem>>, vector<1x8x64xf32>
    %118 = vector.shape_cast %117 : vector<1x8x64xf32> to vector<8x64xf32>
    %119 = arith.mulf %118, %87 : vector<8x64xf32>
    %120 = arith.index_cast %c0_i32 : i32 to index
    %c0_56 = arith.constant 0 : index
    %c0_57 = arith.constant 0 : index
    %121 = vector.load %arg14[%120, %c0_56, %c0_57] : memref<8x8x64xf32, #tpu.memory_space<vmem>>, vector<1x8x64xf32>
    %122 = vector.shape_cast %121 : vector<1x8x64xf32> to vector<8x64xf32>
    %123 = arith.addf %119, %122 : vector<8x64xf32>
    %124 = arith.index_cast %c0_i32 : i32 to index
    %c0_58 = arith.constant 0 : index
    %c0_59 = arith.constant 0 : index
    %125 = vector.load %arg15[%124, %c0_58, %c0_59] : memref<8x8x1xf32, #tpu.memory_space<vmem>>, vector<1x8x1xf32>
    %126 = vector.shape_cast %125 : vector<1x8x1xf32> to vector<8x1xf32>
    %127 = vector.broadcast %126 : vector<8x1xf32> to vector<8x64xf32>
    %128 = arith.mulf %123, %127 : vector<8x64xf32>
    %cst_60 = arith.constant dense<0.000000e+00> : vector<64xf32>
    %129 = vector.multi_reduction <add>, %128, %cst_60 [0] : vector<8x64xf32> to vector<64xf32>
    %130 = vector.shape_cast %129 : vector<64xf32> to vector<1x64xf32>
    %c0_i32_61 = arith.constant 0 : i32
    %131 = arith.addi %c0_i32_61, %c0_i32 : i32
    %132 = arith.index_cast %131 : i32 to index
    %c0_62 = arith.constant 0 : index
    %133 = vector.load %arg16[%132, %c0_62] : memref<8x64xf32, #tpu.memory_space<vmem>>, vector<1x64xf32>
    tpu.vector_store %arg16[%132, %c0_62], %130 {strides = array<i32>} : memref<8x64xf32, #tpu.memory_space<vmem>>, vector<1x64xf32>,
    %c1_i32_63 = arith.constant 1 : i32
    %134 = arith.index_cast %c1_i32_63 : i32 to index
    %c0_64 = arith.constant 0 : index
    %c0_65 = arith.constant 0 : index
    %135 = vector.load %arg13[%134, %c0_64, %c0_65] : memref<8x8x64xf32, #tpu.memory_space<vmem>>, vector<1x8x64xf32>
    %136 = vector.shape_cast %135 : vector<1x8x64xf32> to vector<8x64xf32>
    %137 = arith.mulf %136, %123 : vector<8x64xf32>
    %138 = arith.index_cast %c1_i32_63 : i32 to index
    %c0_66 = arith.constant 0 : index
    %c0_67 = arith.constant 0 : index
    %139 = vector.load %arg14[%138, %c0_66, %c0_67] : memref<8x8x64xf32, #tpu.memory_space<vmem>>, vector<1x8x64xf32>
    %140 = vector.shape_cast %139 : vector<1x8x64xf32> to vector<8x64xf32>
    %141 = arith.addf %137, %140 : vector<8x64xf32>
    %142 = arith.index_cast %c1_i32_63 : i32 to index
    %c0_68 = arith.constant 0 : index
    %c0_69 = arith.constant 0 : index
    %143 = vector.load %arg15[%142, %c0_68, %c0_69] : memref<8x8x1xf32, #tpu.memory_space<vmem>>, vector<1x8x1xf32>
    %144 = vector.shape_cast %143 : vector<1x8x1xf32> to vector<8x1xf32>
    %145 = vector.broadcast %144 : vector<8x1xf32> to vector<8x64xf32>
    %146 = arith.mulf %141, %145 : vector<8x64xf32>
    %cst_70 = arith.constant dense<0.000000e+00> : vector<64xf32>
    %147 = vector.multi_reduction <add>, %146, %cst_70 [0] : vector<8x64xf32> to vector<64xf32>
    %148 = vector.shape_cast %147 : vector<64xf32> to vector<1x64xf32>
    %c0_i32_71 = arith.constant 0 : i32
    %149 = arith.addi %c0_i32_71, %c1_i32_63 : i32
    %150 = arith.index_cast %149 : i32 to index
    %c0_72 = arith.constant 0 : index
    %151 = vector.load %arg16[%150, %c0_72] : memref<8x64xf32, #tpu.memory_space<vmem>>, vector<1x64xf32>
    tpu.vector_store %arg16[%150, %c0_72], %148 {strides = array<i32>} : memref<8x64xf32, #tpu.memory_space<vmem>>, vector<1x64xf32>,
    %c2_i32_73 = arith.constant 2 : i32
    %152 = arith.index_cast %c2_i32_73 : i32 to index
    %c0_74 = arith.constant 0 : index
    %c0_75 = arith.constant 0 : index
    %153 = vector.load %arg13[%152, %c0_74, %c0_75] : memref<8x8x64xf32, #tpu.memory_space<vmem>>, vector<1x8x64xf32>
    %154 = vector.shape_cast %153 : vector<1x8x64xf32> to vector<8x64xf32>
    %155 = arith.mulf %154, %141 : vector<8x64xf32>
    %156 = arith.index_cast %c2_i32_73 : i32 to index
    %c0_76 = arith.constant 0 : index
    %c0_77 = arith.constant 0 : index
    %157 = vector.load %arg14[%156, %c0_76, %c0_77] : memref<8x8x64xf32, #tpu.memory_space<vmem>>, vector<1x8x64xf32>
    %158 = vector.shape_cast %157 : vector<1x8x64xf32> to vector<8x64xf32>
    %159 = arith.addf %155, %158 : vector<8x64xf32>
    %160 = arith.index_cast %c2_i32_73 : i32 to index
    %c0_78 = arith.constant 0 : index
    %c0_79 = arith.constant 0 : index
    %161 = vector.load %arg15[%160, %c0_78, %c0_79] : memref<8x8x1xf32, #tpu.memory_space<vmem>>, vector<1x8x1xf32>
    %162 = vector.shape_cast %161 : vector<1x8x1xf32> to vector<8x1xf32>
    %163 = vector.broadcast %162 : vector<8x1xf32> to vector<8x64xf32>
    %164 = arith.mulf %159, %163 : vector<8x64xf32>
    %cst_80 = arith.constant dense<0.000000e+00> : vector<64xf32>
    %165 = vector.multi_reduction <add>, %164, %cst_80 [0] : vector<8x64xf32> to vector<64xf32>
    %166 = vector.shape_cast %165 : vector<64xf32> to vector<1x64xf32>
    %c0_i32_81 = arith.constant 0 : i32
    %167 = arith.addi %c0_i32_81, %c2_i32_73 : i32
    %168 = arith.index_cast %167 : i32 to index
    %c0_82 = arith.constant 0 : index
    %169 = vector.load %arg16[%168, %c0_82] : memref<8x64xf32, #tpu.memory_space<vmem>>, vector<1x64xf32>
    tpu.vector_store %arg16[%168, %c0_82], %166 {strides = array<i32>} : memref<8x64xf32, #tpu.memory_space<vmem>>, vector<1x64xf32>,
    %c3_i32_83 = arith.constant 3 : i32
    %170 = arith.index_cast %c3_i32_83 : i32 to index
    %c0_84 = arith.constant 0 : index
    %c0_85 = arith.constant 0 : index
    %171 = vector.load %arg13[%170, %c0_84, %c0_85] : memref<8x8x64xf32, #tpu.memory_space<vmem>>, vector<1x8x64xf32>
    %172 = vector.shape_cast %171 : vector<1x8x64xf32> to vector<8x64xf32>
    %173 = arith.mulf %172, %159 : vector<8x64xf32>
    %174 = arith.index_cast %c3_i32_83 : i32 to index
    %c0_86 = arith.constant 0 : index
    %c0_87 = arith.constant 0 : index
    %175 = vector.load %arg14[%174, %c0_86, %c0_87] : memref<8x8x64xf32, #tpu.memory_space<vmem>>, vector<1x8x64xf32>
    %176 = vector.shape_cast %175 : vector<1x8x64xf32> to vector<8x64xf32>
    %177 = arith.addf %173, %176 : vector<8x64xf32>
    %178 = arith.index_cast %c3_i32_83 : i32 to index
    %c0_88 = arith.constant 0 : index
    %c0_89 = arith.constant 0 : index
    %179 = vector.load %arg15[%178, %c0_88, %c0_89] : memref<8x8x1xf32, #tpu.memory_space<vmem>>, vector<1x8x1xf32>
    %180 = vector.shape_cast %179 : vector<1x8x1xf32> to vector<8x1xf32>
    %181 = vector.broadcast %180 : vector<8x1xf32> to vector<8x64xf32>
    %182 = arith.mulf %177, %181 : vector<8x64xf32>
    %cst_90 = arith.constant dense<0.000000e+00> : vector<64xf32>
    %183 = vector.multi_reduction <add>, %182, %cst_90 [0] : vector<8x64xf32> to vector<64xf32>
    %184 = vector.shape_cast %183 : vector<64xf32> to vector<1x64xf32>
    %c0_i32_91 = arith.constant 0 : i32
    %185 = arith.addi %c0_i32_91, %c3_i32_83 : i32
    %186 = arith.index_cast %185 : i32 to index
    %c0_92 = arith.constant 0 : index
    %187 = vector.load %arg16[%186, %c0_92] : memref<8x64xf32, #tpu.memory_space<vmem>>, vector<1x64xf32>
    tpu.vector_store %arg16[%186, %c0_92], %184 {strides = array<i32>} : memref<8x64xf32, #tpu.memory_space<vmem>>, vector<1x64xf32>,
    %c4_i32 = arith.constant 4 : i32
    %188 = arith.index_cast %c4_i32 : i32 to index
    %c0_93 = arith.constant 0 : index
    %c0_94 = arith.constant 0 : index
    %189 = vector.load %arg13[%188, %c0_93, %c0_94] : memref<8x8x64xf32, #tpu.memory_space<vmem>>, vector<1x8x64xf32>
    %190 = vector.shape_cast %189 : vector<1x8x64xf32> to vector<8x64xf32>
    %191 = arith.mulf %190, %177 : vector<8x64xf32>
    %192 = arith.index_cast %c4_i32 : i32 to index
    %c0_95 = arith.constant 0 : index
    %c0_96 = arith.constant 0 : index
    %193 = vector.load %arg14[%192, %c0_95, %c0_96] : memref<8x8x64xf32, #tpu.memory_space<vmem>>, vector<1x8x64xf32>
    %194 = vector.shape_cast %193 : vector<1x8x64xf32> to vector<8x64xf32>
    %195 = arith.addf %191, %194 : vector<8x64xf32>
    %196 = arith.index_cast %c4_i32 : i32 to index
    %c0_97 = arith.constant 0 : index
    %c0_98 = arith.constant 0 : index
    %197 = vector.load %arg15[%196, %c0_97, %c0_98] : memref<8x8x1xf32, #tpu.memory_space<vmem>>, vector<1x8x1xf32>
    %198 = vector.shape_cast %197 : vector<1x8x1xf32> to vector<8x1xf32>
    %199 = vector.broadcast %198 : vector<8x1xf32> to vector<8x64xf32>
    %200 = arith.mulf %195, %199 : vector<8x64xf32>
    %cst_99 = arith.constant dense<0.000000e+00> : vector<64xf32>
    %201 = vector.multi_reduction <add>, %200, %cst_99 [0] : vector<8x64xf32> to vector<64xf32>
    %202 = vector.shape_cast %201 : vector<64xf32> to vector<1x64xf32>
    %c0_i32_100 = arith.constant 0 : i32
    %203 = arith.addi %c0_i32_100, %c4_i32 : i32
    %204 = arith.index_cast %203 : i32 to index
    %c0_101 = arith.constant 0 : index
    %205 = vector.load %arg16[%204, %c0_101] : memref<8x64xf32, #tpu.memory_space<vmem>>, vector<1x64xf32>
    tpu.vector_store %arg16[%204, %c0_101], %202 {strides = array<i32>} : memref<8x64xf32, #tpu.memory_space<vmem>>, vector<1x64xf32>,
    %c5_i32 = arith.constant 5 : i32
    %206 = arith.index_cast %c5_i32 : i32 to index
    %c0_102 = arith.constant 0 : index
    %c0_103 = arith.constant 0 : index
    %207 = vector.load %arg13[%206, %c0_102, %c0_103] : memref<8x8x64xf32, #tpu.memory_space<vmem>>, vector<1x8x64xf32>
    %208 = vector.shape_cast %207 : vector<1x8x64xf32> to vector<8x64xf32>
    %209 = arith.mulf %208, %195 : vector<8x64xf32>
    %210 = arith.index_cast %c5_i32 : i32 to index
    %c0_104 = arith.constant 0 : index
    %c0_105 = arith.constant 0 : index
    %211 = vector.load %arg14[%210, %c0_104, %c0_105] : memref<8x8x64xf32, #tpu.memory_space<vmem>>, vector<1x8x64xf32>
    %212 = vector.shape_cast %211 : vector<1x8x64xf32> to vector<8x64xf32>
    %213 = arith.addf %209, %212 : vector<8x64xf32>
    %214 = arith.index_cast %c5_i32 : i32 to index
    %c0_106 = arith.constant 0 : index
    %c0_107 = arith.constant 0 : index
    %215 = vector.load %arg15[%214, %c0_106, %c0_107] : memref<8x8x1xf32, #tpu.memory_space<vmem>>, vector<1x8x1xf32>
    %216 = vector.shape_cast %215 : vector<1x8x1xf32> to vector<8x1xf32>
    %217 = vector.broadcast %216 : vector<8x1xf32> to vector<8x64xf32>
    %218 = arith.mulf %213, %217 : vector<8x64xf32>
    %cst_108 = arith.constant dense<0.000000e+00> : vector<64xf32>
    %219 = vector.multi_reduction <add>, %218, %cst_108 [0] : vector<8x64xf32> to vector<64xf32>
    %220 = vector.shape_cast %219 : vector<64xf32> to vector<1x64xf32>
    %c0_i32_109 = arith.constant 0 : i32
    %221 = arith.addi %c0_i32_109, %c5_i32 : i32
    %222 = arith.index_cast %221 : i32 to index
    %c0_110 = arith.constant 0 : index
    %223 = vector.load %arg16[%222, %c0_110] : memref<8x64xf32, #tpu.memory_space<vmem>>, vector<1x64xf32>
    tpu.vector_store %arg16[%222, %c0_110], %220 {strides = array<i32>} : memref<8x64xf32, #tpu.memory_space<vmem>>, vector<1x64xf32>,
    %c6_i32 = arith.constant 6 : i32
    %224 = arith.index_cast %c6_i32 : i32 to index
    %c0_111 = arith.constant 0 : index
    %c0_112 = arith.constant 0 : index
    %225 = vector.load %arg13[%224, %c0_111, %c0_112] : memref<8x8x64xf32, #tpu.memory_space<vmem>>, vector<1x8x64xf32>
    %226 = vector.shape_cast %225 : vector<1x8x64xf32> to vector<8x64xf32>
    %227 = arith.mulf %226, %213 : vector<8x64xf32>
    %228 = arith.index_cast %c6_i32 : i32 to index
    %c0_113 = arith.constant 0 : index
    %c0_114 = arith.constant 0 : index
    %229 = vector.load %arg14[%228, %c0_113, %c0_114] : memref<8x8x64xf32, #tpu.memory_space<vmem>>, vector<1x8x64xf32>
    %230 = vector.shape_cast %229 : vector<1x8x64xf32> to vector<8x64xf32>
    %231 = arith.addf %227, %230 : vector<8x64xf32>
    %232 = arith.index_cast %c6_i32 : i32 to index
    %c0_115 = arith.constant 0 : index
    %c0_116 = arith.constant 0 : index
    %233 = vector.load %arg15[%232, %c0_115, %c0_116] : memref<8x8x1xf32, #tpu.memory_space<vmem>>, vector<1x8x1xf32>
    %234 = vector.shape_cast %233 : vector<1x8x1xf32> to vector<8x1xf32>
    %235 = vector.broadcast %234 : vector<8x1xf32> to vector<8x64xf32>
    %236 = arith.mulf %231, %235 : vector<8x64xf32>
    %cst_117 = arith.constant dense<0.000000e+00> : vector<64xf32>
    %237 = vector.multi_reduction <add>, %236, %cst_117 [0] : vector<8x64xf32> to vector<64xf32>
    %238 = vector.shape_cast %237 : vector<64xf32> to vector<1x64xf32>
    %c0_i32_118 = arith.constant 0 : i32
    %239 = arith.addi %c0_i32_118, %c6_i32 : i32
    %240 = arith.index_cast %239 : i32 to index
    %c0_119 = arith.constant 0 : index
    %241 = vector.load %arg16[%240, %c0_119] : memref<8x64xf32, #tpu.memory_space<vmem>>, vector<1x64xf32>
    tpu.vector_store %arg16[%240, %c0_119], %238 {strides = array<i32>} : memref<8x64xf32, #tpu.memory_space<vmem>>, vector<1x64xf32>,
    %c7_i32 = arith.constant 7 : i32
    %242 = arith.index_cast %c7_i32 : i32 to index
    %c0_120 = arith.constant 0 : index
    %c0_121 = arith.constant 0 : index
    %243 = vector.load %arg13[%242, %c0_120, %c0_121] : memref<8x8x64xf32, #tpu.memory_space<vmem>>, vector<1x8x64xf32>
    %244 = vector.shape_cast %243 : vector<1x8x64xf32> to vector<8x64xf32>
    %245 = arith.mulf %244, %231 : vector<8x64xf32>
    %246 = arith.index_cast %c7_i32 : i32 to index
    %c0_122 = arith.constant 0 : index
    %c0_123 = arith.constant 0 : index
    %247 = vector.load %arg14[%246, %c0_122, %c0_123] : memref<8x8x64xf32, #tpu.memory_space<vmem>>, vector<1x8x64xf32>
    %248 = vector.shape_cast %247 : vector<1x8x64xf32> to vector<8x64xf32>
    %249 = arith.addf %245, %248 : vector<8x64xf32>
    %250 = arith.index_cast %c7_i32 : i32 to index
    %c0_124 = arith.constant 0 : index
    %c0_125 = arith.constant 0 : index
    %251 = vector.load %arg15[%250, %c0_124, %c0_125] : memref<8x8x1xf32, #tpu.memory_space<vmem>>, vector<1x8x1xf32>
    %252 = vector.shape_cast %251 : vector<1x8x1xf32> to vector<8x1xf32>
    %253 = vector.broadcast %252 : vector<8x1xf32> to vector<8x64xf32>
    %254 = arith.mulf %249, %253 : vector<8x64xf32>
    %cst_126 = arith.constant dense<0.000000e+00> : vector<64xf32>
    %255 = vector.multi_reduction <add>, %254, %cst_126 [0] : vector<8x64xf32> to vector<64xf32>
    %256 = vector.shape_cast %255 : vector<64xf32> to vector<1x64xf32>
    %c0_i32_127 = arith.constant 0 : i32
    %257 = arith.addi %c0_i32_127, %c7_i32 : i32
    %258 = arith.index_cast %257 : i32 to index
    %c0_128 = arith.constant 0 : index
    %259 = vector.load %arg16[%258, %c0_128] : memref<8x64xf32, #tpu.memory_space<vmem>>, vector<1x64xf32>
    tpu.vector_store %arg16[%258, %c0_128], %256 {strides = array<i32>} : memref<8x64xf32, #tpu.memory_space<vmem>>, vector<1x64xf32>,
    %c8_i32_129 = arith.constant 8 : i32
    %c0_130 = arith.constant 0 : index
    %c0_131 = arith.constant 0 : index
    %260 = vector.load %arg16[%c0_130, %c0_131] : memref<8x64xf32, #tpu.memory_space<vmem>>, vector<8x64xf32>
    %c0_132 = arith.constant 0 : index
    %c0_133 = arith.constant 0 : index
    %261 = vector.load %arg10[%c0_132, %c0_133] : memref<1x64xf32, #tpu.memory_space<vmem>>, vector<1x64xf32>
    %262 = vector.broadcast %261 : vector<1x64xf32> to vector<8x64xf32>
    %263 = arith.mulf %50, %262 : vector<8x64xf32>
    %264 = arith.addf %260, %263 : vector<8x64xf32>
    %cst_134 = arith.constant 0.000000e+00 : f32
    %265 = vector.broadcast %cst_134 : f32 to vector<8x64xf32>
    %266 = arith.subf %265, %6 : vector<8x64xf32>
    %267 = math.exp %266 : vector<8x64xf32>
    %cst_135 = arith.constant 1.000000e+00 : f32
    %268 = vector.broadcast %cst_135 : f32 to vector<8x64xf32>
    %269 = arith.addf %268, %267 : vector<8x64xf32>
    %cst_136 = arith.constant 1.000000e+00 : f32
    %270 = vector.broadcast %cst_136 : f32 to vector<8x64xf32>
    %271 = arith.divf %270, %269 : vector<8x64xf32>
    %272 = arith.mulf %6, %271 : vector<8x64xf32>
    %273 = arith.mulf %264, %272 : vector<8x64xf32>
    %274 = arith.truncf %273 : vector<8x64xf32> to vector<8x64xbf16>
    %c0_137 = arith.constant 0 : index
    %c0_138 = arith.constant 0 : index
    %275 = vector.load %arg11[%c0_137, %c0_138] : memref<64x32xbf16, #tpu.memory_space<vmem>>, vector<64x32xbf16>
    %cst_139 = arith.constant dense<0.000000e+00> : vector<8x32xf32>
    %276 = tpu.matmul %274, %275, %cst_139 {dimension_numbers = #tpu.dot_dimension_numbers<[1], [0], [0], [1], [0, 0, 1, 1], [], []>} : vector<8x64xbf16>, vector<64x32xbf16>, vector<8x32xf32> -> vector<8x32xf32>
    %c0_140 = arith.constant 0 : index
    %c0_141 = arith.constant 0 : index
    %c0_142 = arith.constant 0 : index
    %277 = vector.load %arg12[%c0_140, %c0_141, %c0_142] : memref<1x8x32xf32, #tpu.memory_space<vmem>>, vector<1x8x32xf32>
    %278 = vector.shape_cast %277 : vector<1x8x32xf32> to vector<8x32xf32>
    %279 = vector.shape_cast %276 : vector<8x32xf32> to vector<1x8x32xf32>
    tpu.vector_store %arg12[%c0_140, %c0_141, %c0_142], %279 {strides = array<i32>} : memref<1x8x32xf32, #tpu.memory_space<vmem>>, vector<1x8x32xf32>,
    return
  }
  func.func @transform_0(%arg0: i32) -> (i32, i32, i32) {
    %c0_i32 = arith.constant 0 : i32
    %c0_i32_0 = arith.constant 0 : i32
    %c0_i32_1 = arith.constant 0 : i32
    return %arg0, %c0_i32, %c0_i32_0 : i32, i32, i32
  }
  func.func @transform_1(%arg0: i32) -> (i32, i32) {
    %c0_i32 = arith.constant 0 : i32
    %c0_i32_0 = arith.constant 0 : i32
    %c0_i32_1 = arith.constant 0 : i32
    return %c0_i32, %c0_i32_0 : i32, i32
  }
  func.func @transform_2(%arg0: i32) -> (i32, i32) {
    %c0_i32 = arith.constant 0 : i32
    %c0_i32_0 = arith.constant 0 : i32
    %c0_i32_1 = arith.constant 0 : i32
    return %c0_i32, %c0_i32_0 : i32, i32
  }
  func.func @transform_3(%arg0: i32) -> (i32, i32) {
    %c0_i32 = arith.constant 0 : i32
    %c0_i32_0 = arith.constant 0 : i32
    %c0_i32_1 = arith.constant 0 : i32
    return %c0_i32, %c0_i32_0 : i32, i32
  }
  func.func @transform_4(%arg0: i32) -> (i32, i32) {
    %c0_i32 = arith.constant 0 : i32
    %c0_i32_0 = arith.constant 0 : i32
    %c0_i32_1 = arith.constant 0 : i32
    return %c0_i32, %c0_i32_0 : i32, i32
  }
  func.func @transform_5(%arg0: i32) -> (i32, i32) {
    %c0_i32 = arith.constant 0 : i32
    %c0_i32_0 = arith.constant 0 : i32
    %c0_i32_1 = arith.constant 0 : i32
    return %c0_i32, %c0_i32_0 : i32, i32
  }
  func.func @transform_6(%arg0: i32) -> (i32, i32) {
    %c0_i32 = arith.constant 0 : i32
    %c0_i32_0 = arith.constant 0 : i32
    %c0_i32_1 = arith.constant 0 : i32
    return %c0_i32, %c0_i32_0 : i32, i32
  }
  func.func @transform_7(%arg0: i32) -> (i32, i32) {
    %c0_i32 = arith.constant 0 : i32
    %c0_i32_0 = arith.constant 0 : i32
    %c0_i32_1 = arith.constant 0 : i32
    return %c0_i32, %c0_i32_0 : i32, i32
  }
  func.func @transform_8(%arg0: i32) -> (i32, i32) {
    %c0_i32 = arith.constant 0 : i32
    %c0_i32_0 = arith.constant 0 : i32
    %c0_i32_1 = arith.constant 0 : i32
    return %c0_i32, %c0_i32_0 : i32, i32
  }
  func.func @transform_9(%arg0: i32) -> (i32, i32) {
    %c0_i32 = arith.constant 0 : i32
    %c0_i32_0 = arith.constant 0 : i32
    %c0_i32_1 = arith.constant 0 : i32
    return %c0_i32, %c0_i32_0 : i32, i32
  }
  func.func @transform_10(%arg0: i32) -> (i32, i32) {
    %c0_i32 = arith.constant 0 : i32
    %c0_i32_0 = arith.constant 0 : i32
    %c0_i32_1 = arith.constant 0 : i32
    return %c0_i32, %c0_i32_0 : i32, i32
  }
  func.func @transform_11(%arg0: i32) -> (i32, i32, i32) {
    %c0_i32 = arith.constant 0 : i32
    %c0_i32_0 = arith.constant 0 : i32
    %c0_i32_1 = arith.constant 0 : i32
    return %arg0, %c0_i32, %c0_i32_0 : i32, i32, i32
  }
}

</mosaic_0001>

<bundles_post_ra>
// kernel: tpu_custom_call.1
= control target key start
LH: loop header
LB: loop body
LE: loop exit
PB: predicated region body
PF: predicated region fallthrough
CT: control target
= control target key end

     0   :  { %s2139_s0 = inlined_call_operand.vmem [shape: f32[2,8,32], index: 0, kind: input, shape index: {}]   ;;  %s2140_s1 = inlined_call_operand.vmem [shape: bf16[32,64], index: 1, kind: input, shape index: {}]   ;;  %s2141_s2 = inlined_call_operand.vmem [shape: bf16[32,64], index: 2, kind: input, shape index: {}]   ;;  %s2142_s3 = inlined_call_operand.vmem [shape: f32[4,64], index: 3, kind: input, shape index: {}]   ;;  %s2143_s4 = inlined_call_operand.vmem [shape: f32[1,64], index: 4, kind: input, shape index: {}]   ;;  %s2144_s5 = inlined_call_operand.vmem [shape: bf16[64,18], index: 5, kind: input, shape index: {}]   ;;  %s2145_s6 = inlined_call_operand.vmem [shape: f32[2,64], index: 6, kind: input, shape index: {}]   ;;  %s2146_s7 = inlined_call_operand.vmem [shape: f32[1,64], index: 7, kind: input, shape index: {}]   ;;  %s2147_s8 = inlined_call_operand.vmem [shape: f32[8,64], index: 8, kind: input, shape index: {}]   ;;  %s2148_s9 = inlined_call_operand.vmem [shape: f32[1,64], index: 9, kind: input, shape index: {}]   ;;  %s2149_s10 = inlined_call_operand.vmem [shape: bf16[64,32], index: 10, kind: input, shape index: {}]   ;;  %s2150_s11 = inlined_call_operand.hbm [shape: f32[2,8,32], index: 11, kind: output, shape index: {}]  }
   0x1   :  { %2151 = sst [smem:[#allocation9_spill]] %s2139_s0 }
   0x2   :  { %16 = vsyncpa [#allocation7], 0 }
   0x3   :  { %18 = vsyncpa [#allocation7 + $0x1], 0  ;;  %s1787_s17 = smov 0   ;;  %s1789_s18 = smov 0  }
   0x4   :  { %s1791_s19 = smov 0   ;;  %s1793_s20 = smov 0  }
   0x5 LB: > { %s1808_s21 = sadd.s32 4294967295, %s1720_s20   ;;  %s1475_s22 = sadd.s32 4294967294, %s1720_s20   ;;  %s1720_s20 = sphi %s1793_s20, %s2162_s20   ;;  %s1716_s19 = sphi %s1791_s19, %s2161_s19   ;;  %s1712_s18 = sphi %s1789_s18, %s2160_s18   ;;  %s1708_s17 = sphi %s1787_s17, %s2159_s17  }
   0x6   : > { %s1812_s23 = sadd.s32 1, %s1720_s20   ;;  %s267_s24 = sadd.s32 1, %s1716_s19 }
   0x7   : > { %s264_s25 = ssub.s32 %s1720_s20, %s1812_s23  ;;  %p277_p0 = scmp.ne.s32.totalorder %s1716_s19, %s1712_s18 }
   0x8   : > { %p265_p1 = scmp.eq.s32.totalorder %s264_s25, 0  ;;  %p278_p2 = scmp.eq.s32.totalorder %s1808_s21, 1 }
   0x9   : > { %p283_p3 = scmp.ne.s32.totalorder %s1712_s18, %s1708_s17  ;;  %p284_p4 = scmp.eq.s32.totalorder %s1475_s22, 1 }
   0xa   : > { %s1823_s26 = scalar_select %p265_p1, %s1716_s19, %s267_s24  }
   0xb   : > { %p1825_p5 = por %p278_p2, %p277_p0  ;;  %p1829_p6 = por %p284_p4, %p283_p3 }
   0xc   : > { %p1478_p7 = scmp.ge.s32.totalorder %s1720_s20, 1  ;;  %p339_p8 = scmp.lt.s32.totalorder %s1720_s20, 3 }
   0xe   : > { %p340_p9 = pnand %p1478_p7, %p339_p8 }
   0xf   : > { %p378_p10 = scmp.lt.s32.totalorder (!%p340_p9), %s1808_s21, 1  ;;  %s2154_s0 = sld [smem:[#allocation9_spill]] (!%p340_p9) }
  0x10   : > { %343 = sbr.rel (%p340_p9) target bundleno = 1011 (0x3f3), region = 64  ;;  %s375_s22 = sand.u32 (!%p340_p9), 1, %s1712_s18  }
  0x11   : > { %s1507_s25 = sshll.u32 (!%p340_p9), %s1808_s21, 7 }
  0x15   : > { %v1618_v0 = vld [vmem:[%s2140_s1 + $0x8] sm:$0xff]   ;;  %v1722_v1 = vmov 0.0   ;;  %v1619_v2 = vld [vmem:[%s2140_s1] sm:$0xff]   ;;  %vm1723_vm0 = vmmov 0   ;;  %s379_s14 = scalar_select %p378_p10, %s1808_s21, 1  ;;  %vm401_vm1 = vcmask 261120   ;;  %v501_v9 = vlaneseq }
  0x16   : > { %1528 = vmatprep.subr.bf16.mxu0 %v1722_v1  ;;  %1536 = vmatprep.subr.bf16.mxu1 %v1722_v1  ;;  %v1620_v5 = vld [vmem:[%s2144_s5 + $0x18] sm:$0xff]   ;;  %v1621_v6 = vld [vmem:[%s2144_s5 + $0x10] sm:$0xff]   ;;  %v1622_v7 = vld [vmem:[%s2144_s5 + $0x8] sm:$0xff]   ;;  %vm588_vm5 = vcmask 523264   ;;  %vm644_vm6 = vcmask 1041408   ;;  %vm640_vm7 = vcmask 15360  }
  0x17   : > { %1529 = vmatpush3.bf16.msra.mxu0 %v1618_v0  ;;  %1532 = vmatprep.mubr.msk.bf16.mxu0 %vm1723_vm0, %v1722_v1  ;;  %s1480_s15 = sshll.u32 %s379_s14, 3  ;;  %v1623_v8 = vld [vmem:[%s2144_s5] sm:$0xff]   ;;  %v502_v10 = vshrl.u32 %v501_v9, 7  ;;  %v1624_v42 = vld [vmem:[%s2141_s2 + $0x8] sm:$0xff]   ;;  %v1724_v44 = vmov 1966171168   ;;  %s2097_s14 = scalar_lea.hbm %s2150_s11, %s1507_s25 }
  0x18   : > { %1530 = vmatprep.subr.bf16.mxu0 %v1722_v1  ;;  %1540 = vmatprep.mubr.msk.bf16.mxu1 %vm1723_vm0, %v1722_v1  ;;  %s381_s24 = scalar_lea.vmem %s2154_s0, %s1480_s15  ;;  %v1487_v12 = vld [vmem:[%s2142_s3] ss:$0 sm:$0xff]  ;;  %v1488_v15 = vld [vmem:[%s2142_s3 + $0x1] ss:$0 sm:$0xff]  ;;  %v1489_v21 = vld [vmem:[%s2142_s3 + $0x2] ss:$0 sm:$0xff]  ;;  %v740_v45 = vunpack.c.l.s4 %v1724_v44 }
  0x19   : > { %v383_v3 = vld [vmem:[%s381_s24] sm:$0xff]  ;;  %vm503_vm2 = vcmp.ge.s32.totalorder %v502_v10, 3  ;;  %vm513_vm3 = vcmp.ge.s32.totalorder %v502_v10, 2  ;;  %vm523_vm4 = vcmp.ge.s32.totalorder %v502_v10, 1  ;;  %1537 = vmatpush3.bf16.msra.mxu1 %v1624_v42  ;;  %v734_v47 = vadd.s32 2, %v502_v10  ;;  %s1479_s24 = sshll.u32 %s375_s22, 3 }
  0x1a   : > { %v1854_v4 = vpack.c.bf16 %v383_v3, %v383_v3  ;;  %v1490_v25 = vld [vmem:[%s2142_s3 + $0x3] ss:$0 sm:$0xff]  ;;  %v1491_v31 = vld [vmem:[%s2143_s4] ss:$0 sm:$0xff]  ;;  %1538 = vmatprep.subr.bf16.mxu1 %v1722_v1  ;;  %v741_v46 = vunpack.c.0.s8 %v740_v45  ;;  %v733_v50 = vand.u32 127, %v501_v9  ;;  %v1915_v52 = vsub.s32 0, %v502_v10 }
  0x1b   : > { %1531 = vmatpush3.bf16.msra.mxu0 %v1619_v2  ;;  %v632_v41 = vld [vmem:[%s2145_s6] sm:$0x3]  ;;  %v736_v51 = vadd.s32 8, %v734_v47  ;;  %vm837_vm9 = vcmask 146432   ;;  %vm1124_vm11 = vcmask 7168   ;;  %vm1151_vm12 = vcmask 516096  }
  0x1c   : > { %1544 = vmatprep.subr.bf16.mxu0 %v1722_v1  ;;  %v1625_v43 = vld [vmem:[%s2141_s2] sm:$0xff]   ;;  %v1913_v48 = vsub.s32 %v741_v46, %v502_v10  ;;  %vm1955_vm10 = vcmp.eq.s32.totalorder %v733_v50, %v734_v47  ;;  %s377_s29 = scalar_lea.vmem [#allocation6], %s1479_s24  ;;  %s1403_s15 = scalar_lea.sflag [#allocation7], %s375_s22 }
  0x1d   : > { %1539 = vmatpush3.bf16.msra.mxu1 %v1625_v43  ;;  %vm1920_vm8 = vcmp.eq.s32.totalorder %v733_v50, %v736_v51  ;;  %s1416_s30 = sshll.u32 %s377_s29, 4  ;;  %s1726_s21 = smov [#allocation6]   ;;  %s2099_s30 = int_to_ptr.vmem [resolvable:$true] %s1416_s30 }
  0x1e   : > { %1533 = vmatmul.mubr.msk.bf16.vlgmr.msra.gmra.mxu0 %vm401_vm1, %v1854_v4  ;;  %1561 = vmatprep.subr.bf16.mxu1 %v1722_v1  ;;  %s1660_s16 = scalar_lea.vmem %s2099_s30, 128  ;;  %s1664_s24 = sshll.u32 %s1726_s21, 4  ;;  %s1665_s24 = int_to_ptr.vmem [resolvable:$false] %s1664_s24 }
  0x1f   : > { %1552 = vmatprep.mubr.msk.bf16.mxu0 %vm1723_vm0, %v1722_v1  ;;  %1545 = vmatpush3.bf16.msra.mxu0 %v1620_v5  ;;  %p1661_p11 = scmp.ne.s32.totalorder %s2099_s30, %s1660_s16  ;;  %s1666_s25 = scalar_lea.vmem %s1665_s24, 256 }
  0x20   : > { %1546 = vmatprep.subr.bf16.mxu0 %v1722_v1  ;;  %1541 = vmatmul.mubr.msk.bf16.vlgmr.msra.gmra.mxu1 %vm401_vm1, %v1854_v4  ;;  %p1667_p0 = scmp.lt.s32.totalorder %s2099_s30, %s1665_s24  ;;  %p1668_p1 = scmp.lt.s32.totalorder %s1666_s25, %s1660_s16 }
  0x21   : > { %1569 = vmatprep.mubr.msk.bf16.mxu1 %vm1723_vm0, %v1722_v1  ;;  %p1662_p12 = pnand %p1661_p11, %p1825_p5 }
  0x22   : > { %p1669_p2 = por %p1668_p1, %p1667_p0 }
  0x23   : > { %1547 = vmatpush3.bf16.msra.mxu0 %v1621_v6  ;;  %p1663_p13 = pneg %p1662_p12 }
  0x24   : > { %1548 = vmatprep.subr.bf16.mxu0 %v1722_v1 }
  0x25   : > { %p1670_p3 = pnand %p1669_p2, %p1663_p13 }
  0x27   : > { %1549 = vmatpush3.bf16.msra.mxu0 %v1622_v7 }
  0x28   : > { %1550 = vmatprep.subr.bf16.mxu0 %v1722_v1 }
  0x2b   : > { %1551 = vmatpush3.bf16.msra.mxu0 %v1623_v8 }
  0x2c   : > { %1556 = vmatprep.subr.mxu0 %v1722_v1 }
  0xde   : > { %v439_v11 = vpop.f32.mrf.mxu0 }
  0xdf   : > { %v504_v13 = vrot.slane %v439_v11, 5  ;;  %v514_v14 = vrot.slane %v439_v11, 6  ;;  %v524_v16 = vrot.slane %v439_v11, 7  ;;  %v538_v30 = vmul.f32 %v1490_v25, %v439_v11 }
  0xe0   : > { %v1534_v17 = vpop.f32.mrf.mxu0  ;;  %v1987_v51 = vpop.f32.mrf.mxu1 }
  0xe1   : > { %v505_v18 = vsel %vm503_vm2, %v504_v13, 0.0  ;;  %v515_v19 = vsel %vm513_vm3, %v514_v14, 0.0  ;;  %v525_v20 = vsel %vm523_vm4, %v524_v16, 0.0 }
  0xe2   : > { %v511_v22 = vmul.f32 %v1487_v12, %v505_v18  ;;  %v521_v23 = vmul.f32 %v1488_v15, %v515_v19  ;;  %v442_v24 = vpop.f32.mrf.mxu0  ;;  %v531_v27 = vmul.f32 %v1489_v21, %v525_v20 }
  0xe4   : > { %v522_v26 = vadd.f32 %v521_v23, %v511_v22  ;;  %v1535_v28 = vpop.f32.mrf.mxu0 }
  0xe6   : > { %v532_v29 = vadd.f32 %v531_v27, %v522_v26 }
  0xe8   : > { %v539_v32 = vadd.f32 %v538_v30, %v532_v29 }
  0xea   : > { %v547_v33 = vadd.f32 %v1491_v31, %v539_v32 }
  0xec   : > { %v548_v34 = vsub.f32 0.0, %v547_v33 }
  0xee   : > { %v549_v35 = vmul.f32 1.442695, %v548_v34 }
  0xf0   : > { %1630 = vpow2.f32 %v549_v35 }
  0xfd   : > { %v1631_v36 = vpop.eup %1630 }
  0xfe   : > { %v551_v37 = vadd.f32 1.0, %v1631_v36 }
 0x100   : > { %1632 = vrcp.f32 %v551_v37  ;;  %v1725_v37 = vmov 0  }
 0x101   : > { %1616 = vset.pattern.permute.xlu0 %v1725_v37  ;;  %1617 = vset.pattern.permute.xlu1 %v1725_v37 }
 0x10d   : > { %v1633_v38 = vpop.eup %1632 }
 0x10e   : > { %v1891_v39 = vmul.f32 %v1633_v38, %v547_v33 }
 0x110   : > { %v555_v40 = vpack.c.bf16 %v1891_v39, %v1891_v39 }
 0x112   : > { %1553 = vmatmul.mubr.msk.bf16.vlgmr.msra.gmra.mxu0 %vm588_vm5, %v555_v40 }
 0x113   : > { %1558 = vmatprep.mubr.msk.f32.mxu0 %vm1723_vm0, %v1722_v1  ;;  %1557 = vmatpush3.msk.msra.mxu0 %vm644_vm6, %v632_v41 }
 0x1d2   : > { %v626_v49 = vpop.f32.mrf.mxu0 }
 0x1d3   : > { %v738_v53 = vcombine.high %v626_v49, %v626_v49  ;;  %v745_v54 = vrot.slane %v626_v49, %v1913_v48  ;;  %1559 = vmatmul.mubr.msk.f32.vlgmr.msra.gmra.mxu0 %vm640_vm7, %v626_v49 }
 0x1d4   : > { %v1554_v55 = vpop.f32.mrf.mxu0 }
 0x1d5   : > { %v752_v56 = vrot.slane %v738_v53, %v1913_v48  ;;  %v753_v57 = vcombine.high %v745_v54, %v745_v54  ;;  %v761_v58 = vrot.slane %v745_v54, %v1913_v48  ;;  %v1542_v53 = vpop.f32.mrf.mxu1 }
 0x1d6   : > { %v629_v59 = vpop.f32.mrf.mxu0 }
 0x1d7   : > { %v790_v61 = vrot.slane %v761_v58, %v1915_v52  ;;  %v783_v62 = vcombine.high %v761_v58, %v761_v58  ;;  %v775_v63 = vrot.slane %v753_v57, %v1913_v48  ;;  %v768_v0 = vrot.slane %v752_v56, %v1913_v48  ;;  %v498_v54 = vpop.f32.mrf.mxu1 }
 0x1d8   : > { %v1555_v2 = vpop.f32.mrf.mxu0  ;;  %v754_v3 = vcombine.high %v752_v56, %v752_v56 }
 0x1d9   : > { %v864_v4 = vsel %vm1920_vm8, %v790_v61, 0.0  ;;  %v798_v5 = vrot.slane %v783_v62, %v1915_v52  ;;  %v794_v6 = vrot.slane %v775_v63, %v1915_v52  ;;  %v785_v7 = vcombine.high %v775_v63, %v775_v63  ;;  %v1543_v56 = vpop.f32.mrf.mxu1 }
 0x1da   : > { %v872_v8 = vsel %vm837_vm9, %v864_v4, 0.0  ;;  %v806_v9 = vrot.slane %v768_v0, %v1915_v52  ;;  %v782_v10 = vrot.slane %v754_v3, %v1913_v48  ;;  %v784_v14 = vcombine.high %v768_v0, %v768_v0 }
 0x1db   : > { %873 = vadd.xlane.f32.xlu0 %v872_v8  ;;  %v866_v11 = vsel %vm1920_vm8, %v798_v5, 0.0  ;;  %v865_v12 = vsel %vm1920_vm8, %v794_v6, 0.0  ;;  %v802_v13 = vrot.slane %v785_v7, %v1915_v52  ;;  %v829_v31 = vsel %vm1955_vm10, %v790_v61, 0.0 }
 0x1dc   : > { %v878_v15 = vsel %vm837_vm9, %v866_v11, 0.0  ;;  %v810_v17 = vrot.slane %v782_v10, %v1915_v52  ;;  %v786_v18 = vcombine.high %v782_v10, %v782_v10  ;;  %v875_v19 = vsel %vm837_vm9, %v865_v12, 0.0  ;;  %v1626_v12 = vld [vmem:[%s2149_s10 + $0x18] sm:$0xff]  }
 0x1dd   : > { %879 = vadd.xlane.f32.xlu1 %v878_v15  ;;  %v867_v16 = vsel %vm1920_vm8, %v802_v13, 0.0  ;;  %v868_v20 = vsel %vm1920_vm8, %v806_v9, 0.0  ;;  %v814_v21 = vrot.slane %v784_v14, %v1915_v52  ;;  %v830_v33 = vsel %vm1955_vm10, %v794_v6, 0.0  ;;  %1562 = vmatpush3.bf16.msra.mxu1 %v1626_v12  ;;  %v1627_v15 = vld [vmem:[%s2149_s10 + $0x10] sm:$0xff]  }
 0x1de   : > { %v881_v22 = vsel %vm837_vm9, %v867_v16, 0.0  ;;  %v869_v23 = vsel %vm1920_vm8, %v810_v17, 0.0  ;;  %v818_v24 = vrot.slane %v786_v18, %v1915_v52  ;;  %v884_v25 = vsel %vm837_vm9, %v868_v20, 0.0  ;;  %1563 = vmatprep.subr.bf16.mxu1 %v1722_v1  ;;  %v1628_v18 = vld [vmem:[%s2149_s10 + $0x8] sm:$0xff]  }
 0x1df   : > { %876 = vadd.xlane.f32.xlu0 %v875_v19  ;;  %v870_v26 = vsel %vm1920_vm8, %v814_v21, 0.0  ;;  %v887_v27 = vsel %vm837_vm9, %v869_v23, 0.0  ;;  %v838_v34 = vsel %vm837_vm9, %v829_v31, 0.0  ;;  %v831_v35 = vsel %vm1955_vm10, %v798_v5, 0.0  ;;  %v1629_v19 = vld [vmem:[%s2149_s10] sm:$0xff]  }
 0x1e0   : > { %v871_v29 = vsel %vm1920_vm8, %v818_v24, 0.0  ;;  %v890_v30 = vsel %vm837_vm9, %v870_v26, 0.0  ;;  %v841_v36 = vsel %vm837_vm9, %v830_v33, 0.0  ;;  %v832_v38 = vsel %vm1955_vm10, %v802_v13, 0.0 }
 0x1e1   : > { %882 = vadd.xlane.f32.xlu1 %v881_v22  ;;  %v893_v32 = vsel %vm837_vm9, %v871_v29, 0.0  ;;  %v844_v40 = vsel %vm837_vm9, %v831_v35, 0.0  ;;  %v833_v41 = vsel %vm1955_vm10, %v806_v9, 0.0  ;;  %v847_v42 = vsel %vm837_vm9, %v832_v38, 0.0  ;;  %v1497_v9 = vld [vmem:[%s2146_s7] ss:$0 sm:$0xff]  ;;  %1564 = vmatpush3.bf16.msra.mxu1 %v1627_v15 }
 0x1e2   : > { %v834_v43 = vsel %vm1955_vm10, %v810_v17, 0.0  ;;  %v850_v44 = vsel %vm837_vm9, %v833_v41, 0.0  ;;  %v835_v45 = vsel %vm1955_vm10, %v814_v21, 0.0  ;;  %v836_v47 = vsel %vm1955_vm10, %v818_v24, 0.0  ;;  %1565 = vmatprep.subr.bf16.mxu1 %v1722_v1  ;;  %v728_v22 = vld [vmem:[%s2147_s8] sm:$0xff] }
 0x1e3   : > { %885 = vadd.xlane.f32.xlu0 %v884_v25  ;;  %v853_v46 = vsel %vm837_vm9, %v834_v43, 0.0  ;;  %v856_v49 = vsel %vm837_vm9, %v835_v45, 0.0  ;;  %v859_v50 = vsel %vm837_vm9, %v836_v47, 0.0  ;;  %v729_v23 = vmul.f32 1.442695, %v728_v22 }
 0x1e5   : > { %888 = vadd.xlane.f32.xlu1 %v887_v27  ;;  %1566 = vmatpush3.bf16.msra.mxu1 %v1628_v18 }
 0x1e6   : > { %1567 = vmatprep.subr.bf16.mxu1 %v1722_v1 }
 0x1e7   : > { %891 = vadd.xlane.f32.xlu0 %v890_v30 }
 0x1e9   : > { %894 = vadd.xlane.f32.xlu1 %v893_v32  ;;  %1568 = vmatpush3.bf16.msra.mxu1 %v1629_v19 }
 0x1eb   : > { %839 = vadd.xlane.f32.xlu0 %v838_v34 }
 0x1ed   : > { %842 = vadd.xlane.f32.xlu1 %v841_v36 }
 0x1ef   : > { %845 = vadd.xlane.f32.xlu0 %v844_v40 }
 0x1f1   : > { %848 = vadd.xlane.f32.xlu1 %v847_v42 }
 0x1f3   : > { %851 = vadd.xlane.f32.xlu0 %v850_v44 }
 0x1f5   : > { %854 = vadd.xlane.f32.xlu1 %v853_v46 }
 0x1f7   : > { %857 = vadd.xlane.f32.xlu0 %v856_v49 }
 0x1f9   : > { %860 = vadd.xlane.f32.xlu1 %v859_v50 }
 0x264   : > { %v874_v55 = vpop.xlane.xlu0 %873 }
 0x265   : > { %1125 = vst.msk [vmem:[#allocation4] sm:$0xff] %vm1124_vm11, %v874_v55 }
 0x266   : > { %v880_v57 = vpop.xlane.xlu1 %879 }
 0x267   : > { %1127 = vst.msk [vmem:[#allocation4 + $0x10] sm:$0xff] %vm1124_vm11, %v880_v57 }
 0x268   : > { %v877_v58 = vpop.xlane.xlu0 %876 }
 0x269   : > { %1126 = vst.msk [vmem:[#allocation4 + $0x8] sm:$0xff] %vm1124_vm11, %v877_v58 }
 0x26a   : > { %v883_v59 = vpop.xlane.xlu1 %882 }
 0x26b   : > { %1128 = vst.msk [vmem:[#allocation4 + $0x18] sm:$0xff] %vm1124_vm11, %v883_v59 }
 0x26c   : > { %v886_v60 = vpop.xlane.xlu0 %885  ;;  %v1137_v61 = vld [vmem:[#allocation4] sm:$0xff] }
 0x26d   : > { %1129 = vst.msk [vmem:[#allocation4 + $0x20] sm:$0xff] %vm1124_vm11, %v886_v60  ;;  %1140 = vperm.xlu0 %1616, %v1137_v61  }
 0x26e   : > { %v889_v62 = vpop.xlane.xlu1 %888  ;;  %v1182_v3 = vld [vmem:[#allocation4 + $0x10] sm:$0xff] }
 0x26f   : > { %1130 = vst.msk [vmem:[#allocation4 + $0x28] sm:$0xff] %vm1124_vm11, %v889_v62 }
 0x270   : > { %v892_v63 = vpop.xlane.xlu0 %891  ;;  %v1160_v0 = vld [vmem:[#allocation4 + $0x8] sm:$0xff] }
 0x271   : > { %1131 = vst.msk [vmem:[#allocation4 + $0x30] sm:$0xff] %vm1124_vm11, %v892_v63  ;;  %1163 = vperm.xlu1 %1617, %v1160_v0  }
 0x272   : > { %v895_v2 = vpop.xlane.xlu1 %894  ;;  %v1204_v5 = vld [vmem:[#allocation4 + $0x18] sm:$0xff] }
 0x273   : > { %1132 = vst.msk [vmem:[#allocation4 + $0x38] sm:$0xff] %vm1124_vm11, %v895_v2 }
 0x274   : > { %v1226_v4 = vld [vmem:[#allocation4 + $0x20] sm:$0xff]  ;;  %v2020_v31 = vpop.xlane.xlu0 %839 }
 0x275   : > { %1185 = vperm.xlu1 %1617, %v1182_v3  }
 0x276   : > { %v1248_v6 = vld [vmem:[#allocation4 + $0x28] sm:$0xff]  ;;  %v2022_v32 = vpop.xlane.xlu1 %842 }
 0x278   : > { %v1270_v7 = vld [vmem:[#allocation4 + $0x30] sm:$0xff]  ;;  %v846_v55 = vpop.xlane.xlu0 %845 }
 0x279   : > { %1229 = vperm.xlu1 %1617, %v1226_v4  }
 0x27a   : > { %v1292_v8 = vld [vmem:[#allocation4 + $0x38] sm:$0xff]  ;;  %v849_v56 = vpop.xlane.xlu1 %848 }
 0x27d   : > { %1207 = vperm.xlu1 %1617, %v1204_v5  }
 0x27e   : > { %v855_v18 = vpop.xlane.xlu1 %854 }
 0x281   : > { %1251 = vperm.xlu1 %1617, %v1248_v6  }
 0x285   : > { %1273 = vperm.xlu1 %1617, %v1270_v7  }
 0x289   : > { %1295 = vperm.xlu1 %1617, %v1292_v8  }
 0x293   : > { %v714_v10 = vpop.f32.mrf.mxu0 }
 0x294   : > { %v715_v11 = vadd.f32 %v1497_v9, %v714_v10 }
 0x295   : > { %v1560_v13 = vpop.f32.mrf.mxu0 }
 0x296   : > { %v719_v14 = vand.u32 2147483647, %v715_v11  ;;  %v718_v25 = vmax.f32 %v715_v11, 0.0 }
 0x298   : > { %v720_v16 = vsub.f32 0.0, %v719_v14 }
 0x29a   : > { %v721_v17 = vmul.f32 1.442695, %v720_v16 }
 0x29c   : > { %1634 = vpow2.f32 %v721_v17  ;;  %v852_v17 = vpop.xlane.xlu0 %851 }
 0x2a9   : > { %v1635_v20 = vpop.eup %1634 }
 0x2aa   : > { %v723_v21 = vadd.f32 1.0, %v1635_v20 }
 0x2ac   : > { %1636 = vlog2.f32 %v723_v21 }
 0x2ad   : > { %1638 = vpow2.f32 %v729_v23 }
 0x2b9   : > { %v1637_v24 = vpop.eup %1636 }
 0x2ba   : > { %v725_v26 = vmul.f32 0.6931472, %v1637_v24  ;;  %v1639_v28 = vpop.eup %1638 }
 0x2bb   : > { %v731_v37 = vsub.f32 0.0, %v1639_v28 }
 0x2bc   : > { %v726_v27 = vadd.f32 %v725_v26, %v718_v25 }
 0x2be   : > { %v727_v29 = vmul.f32 %v726_v27, %v1891_v39  ;;  %v897_v30 = vcombine.high %v726_v27, %v726_v27  ;;  %v904_v1 = vrot.slane %v726_v27, %v1913_v48 }
 0x2c0   : > { %v911_v33 = vrot.slane %v897_v30, %v1913_v48  ;;  %v912_v34 = vcombine.high %v904_v1, %v904_v1  ;;  %v920_v35 = vrot.slane %v904_v1, %v1913_v48  ;;  %v1019_v36 = vcombine.high %v727_v29, %v727_v29 }
 0x2c1   : > { %v1026_v38 = vrot.slane %v727_v29, %v1913_v48 }
 0x2c2   : > { %v913_v40 = vcombine.high %v911_v33, %v911_v33  ;;  %v927_v41 = vrot.slane %v911_v33, %v1913_v48  ;;  %v934_v42 = vrot.slane %v912_v34, %v1913_v48  ;;  %v942_v43 = vcombine.high %v920_v35, %v920_v35 }
 0x2c3   : > { %v949_v44 = vrot.slane %v920_v35, %v1915_v52  ;;  %v1033_v45 = vrot.slane %v1019_v36, %v1913_v48  ;;  %v1034_v46 = vcombine.high %v1026_v38, %v1026_v38  ;;  %v1042_v47 = vrot.slane %v1026_v38, %v1913_v48  ;;  %v861_v38 = vpop.xlane.xlu1 %860 }
 0x2c4   : > { %v941_v49 = vrot.slane %v913_v40, %v1913_v48  ;;  %v943_v50 = vcombine.high %v927_v41, %v927_v41  ;;  %v944_v53 = vcombine.high %v934_v42, %v934_v42  ;;  %v953_v54 = vrot.slane %v934_v42, %v1915_v52 }
 0x2c5   : > { %v957_v57 = vrot.slane %v942_v43, %v1915_v52  ;;  %v965_v58 = vrot.slane %v927_v41, %v1915_v52  ;;  %v986_v59 = vmul.f32 %v949_v44, %v731_v37  ;;  %v1035_v60 = vcombine.high %v1033_v45, %v1033_v45 }
 0x2c6   : > { %v945_v61 = vcombine.high %v941_v49, %v941_v49  ;;  %v961_v62 = vrot.slane %v944_v53, %v1915_v52  ;;  %v969_v63 = vrot.slane %v941_v49, %v1915_v52  ;;  %v973_v0 = vrot.slane %v943_v50, %v1915_v52 }
 0x2c7   : > { %v987_v2 = vmul.f32 %v953_v54, %v731_v37  ;;  %v988_v3 = vmul.f32 %v957_v57, %v731_v37  ;;  %v990_v4 = vmul.f32 %v965_v58, %v731_v37  ;;  %v994_v5 = vmul.f32 1.442695, %v986_v59 }
 0x2c8   : > { %v977_v6 = vrot.slane %v945_v61, %v1915_v52  ;;  %v989_v7 = vmul.f32 %v961_v62, %v731_v37  ;;  %v991_v8 = vmul.f32 %v969_v63, %v731_v37  ;;  %v992_v9 = vmul.f32 %v973_v0, %v731_v37 }
 0x2c9   : > { %1640 = vpow2.f32 %v994_v5  ;;  %v996_v10 = vmul.f32 1.442695, %v987_v2  ;;  %v998_v11 = vmul.f32 1.442695, %v988_v3  ;;  %v1002_v12 = vmul.f32 1.442695, %v990_v4 }
 0x2ca   : > { %v993_v13 = vmul.f32 %v977_v6, %v731_v37  ;;  %v1000_v14 = vmul.f32 1.442695, %v989_v7  ;;  %v1004_v15 = vmul.f32 1.442695, %v991_v8  ;;  %v1006_v16 = vmul.f32 1.442695, %v992_v9  ;;  %v858_v37 = vpop.xlane.xlu0 %857 }
 0x2cb   : > { %1642 = vpow2.f32 %v996_v10  ;;  %v1049_v19 = vrot.slane %v1033_v45, %v1913_v48  ;;  %v1056_v20 = vrot.slane %v1034_v46, %v1913_v48  ;;  %v1063_v21 = vrot.slane %v1035_v60, %v1913_v48 }
 0x2cc   : > { %1644 = vpow2.f32 %v998_v11  ;;  %v1008_v22 = vmul.f32 1.442695, %v993_v13  ;;  %v1064_v23 = vcombine.high %v1042_v47, %v1042_v47  ;;  %v1071_v24 = vrot.slane %v1042_v47, %v1915_v52 }
 0x2cd   : > { %1646 = vpow2.f32 %v1000_v14  ;;  %v1065_v25 = vcombine.high %v1049_v19, %v1049_v19  ;;  %v1066_v26 = vcombine.high %v1056_v20, %v1056_v20  ;;  %v1067_v27 = vcombine.high %v1063_v21, %v1063_v21 }
 0x2ce   : > { %1648 = vpow2.f32 %v1002_v12  ;;  %v1075_v28 = vrot.slane %v1056_v20, %v1915_v52  ;;  %v1079_v29 = vrot.slane %v1064_v23, %v1915_v52  ;;  %v1087_v30 = vrot.slane %v1049_v19, %v1915_v52 }
 0x2cf   : > { %1650 = vpow2.f32 %v1004_v15  ;;  %v1083_v1 = vrot.slane %v1066_v26, %v1915_v52  ;;  %v1091_v48 = vrot.slane %v1063_v21, %v1915_v52  ;;  %v1095_v33 = vrot.slane %v1065_v25, %v1915_v52 }
 0x2d0   : > { %1652 = vpow2.f32 %v1006_v16  ;;  %v1099_v34 = vrot.slane %v1067_v27, %v1915_v52  ;;  %v1108_v35 = vmul.f32 %v1071_v24, %v2020_v31  ;;  %v1109_v36 = vmul.f32 %v1075_v28, %v2022_v32 }
 0x2d1   : > { %1654 = vpow2.f32 %v1008_v22  ;;  %v1110_v40 = vmul.f32 %v1079_v29, %v846_v55  ;;  %v1111_v41 = vmul.f32 %v1083_v1, %v849_v56  ;;  %v1112_v42 = vmul.f32 %v1087_v30, %v852_v17 }
 0x2d2   : > { %v1113_v43 = vmul.f32 %v1091_v48, %v855_v18  ;;  %v1114_v44 = vmul.f32 %v1095_v33, %v858_v37  ;;  %v1115_v45 = vmul.f32 %v1099_v34, %v861_v38  ;;  %1116 = vst.msk [vmem:[#allocation3] sm:$0xff] %vm588_vm5, %v1108_v35  ;;  %1117 = vst.msk [vmem:[#allocation3 + $0x8] sm:$0xff] %vm588_vm5, %v1109_v36  ;;  %v1317_v17 = vsub.f32 0.0, %v1987_v51 }
 0x2d3   : > { %1118 = vst.msk [vmem:[#allocation3 + $0x10] sm:$0xff] %vm588_vm5, %v1110_v40  ;;  %1119 = vst.msk [vmem:[#allocation3 + $0x18] sm:$0xff] %vm588_vm5, %v1111_v41 }
 0x2d4   : > { %1120 = vst.msk [vmem:[#allocation3 + $0x20] sm:$0xff] %vm588_vm5, %v1112_v42  ;;  %1121 = vst.msk [vmem:[#allocation3 + $0x28] sm:$0xff] %vm588_vm5, %v1113_v43  ;;  %v1318_v29 = vmul.f32 1.442695, %v1317_v17 }
 0x2d5   : > { %1122 = vst.msk [vmem:[#allocation3 + $0x30] sm:$0xff] %vm588_vm5, %v1114_v44  ;;  %1123 = vst.msk [vmem:[#allocation3 + $0x38] sm:$0xff] %vm588_vm5, %v1115_v45 }
 0x2d6   : > { %v1641_v52 = vpop.eup %1640  ;;  %1656 = vpow2.f32 %v1318_v29 }
 0x2d7   : > { %1010 = vst.msk [vmem:[#allocation2] sm:$0xff] %vm588_vm5, %v1641_v52 }
 0x2d8   : > { %v1643_v31 = vpop.eup %1642 }
 0x2d9   : > { %v1645_v32 = vpop.eup %1644  ;;  %1011 = vst.msk [vmem:[#allocation2 + $0x8] sm:$0xff] %vm588_vm5, %v1643_v31  ;;  %v1135_v56 = vld [vmem:[#allocation3] sm:$0xff]  ;;  %v1157_v60 = vld [vmem:[#allocation3 + $0x8] sm:$0xff] }
 0x2da   : > { %v1647_v46 = vpop.eup %1646  ;;  %1012 = vst.msk [vmem:[#allocation2 + $0x10] sm:$0xff] %vm588_vm5, %v1645_v32  ;;  %v1179_v2 = vld [vmem:[#allocation3 + $0x10] sm:$0xff]  ;;  %v1201_v10 = vld [vmem:[#allocation3 + $0x18] sm:$0xff] }
 0x2db   : > { %v1649_v47 = vpop.eup %1648  ;;  %1013 = vst.msk [vmem:[#allocation2 + $0x18] sm:$0xff] %vm588_vm5, %v1647_v46  ;;  %v1223_v21 = vld [vmem:[#allocation3 + $0x20] sm:$0xff]  ;;  %v1245_v34 = vld [vmem:[#allocation3 + $0x28] sm:$0xff] }
 0x2dc   : > { %v1651_v49 = vpop.eup %1650  ;;  %1014 = vst.msk [vmem:[#allocation2 + $0x20] sm:$0xff] %vm588_vm5, %v1649_v47 }
 0x2dd   : > { %v1653_v50 = vpop.eup %1652  ;;  %1015 = vst.msk [vmem:[#allocation2 + $0x28] sm:$0xff] %vm588_vm5, %v1651_v49 }
 0x2de   : > { %v1655_v53 = vpop.eup %1654  ;;  %1016 = vst.msk [vmem:[#allocation2 + $0x30] sm:$0xff] %vm588_vm5, %v1653_v50  ;;  %v1133_v54 = vld [vmem:[#allocation2] sm:$0xff]  ;;  %v1267_v50 = vld [vmem:[#allocation3 + $0x30] sm:$0xff] }
 0x2df   : > { %1017 = vst.msk [vmem:[#allocation2 + $0x38] sm:$0xff] %vm588_vm5, %v1655_v53  ;;  %v1134_v55 = vmul.f32 0.0, %v1133_v54 }
 0x2e0   : > { %v1154_v58 = vld [vmem:[#allocation2 + $0x8] sm:$0xff] }
 0x2e1   : > { %v1136_v57 = vadd.f32 %v1135_v56, %v1134_v55  ;;  %v1176_v62 = vld [vmem:[#allocation2 + $0x10] sm:$0xff] }
 0x2e2   : > { %v1198_v5 = vld [vmem:[#allocation2 + $0x18] sm:$0xff] }
 0x2e3   : > { %v1155_v59 = vmul.f32 %v1154_v58, %v1136_v57  ;;  %v1220_v14 = vld [vmem:[#allocation2 + $0x20] sm:$0xff] }
 0x2e4   : > { %v1242_v26 = vld [vmem:[#allocation2 + $0x28] sm:$0xff] }
 0x2e5   : > { %v1158_v61 = vadd.f32 %v1157_v60, %v1155_v59  ;;  %v1264_v41 = vld [vmem:[#allocation2 + $0x30] sm:$0xff] }
 0x2e7   : > { %v1177_v63 = vmul.f32 %v1176_v62, %v1158_v61 }
 0x2e8   : > { %v1141_v0 = vpop.permute.xlu0 %1140 }
 0x2e9   : > { %v1143_v3 = vmul.f32 %v1141_v0, %v1136_v57  ;;  %v1180_v4 = vadd.f32 %v1179_v2, %v1177_v63  ;;  %v1286_v63 = vld [vmem:[#allocation2 + $0x38] sm:$0xff] }
 0x2eb   : > { %v1144_v6 = vsel %vm588_vm5, %v1143_v3, 0.0  ;;  %v1199_v7 = vmul.f32 %v1198_v5, %v1180_v4 }
 0x2ec   : > { %v1145_v8 = vrot.slane %v1144_v6, 4  ;;  %v1164_v9 = vpop.permute.xlu1 %1163 }
 0x2ed   : > { %v1166_v11 = vmul.f32 %v1164_v9, %v1158_v61  ;;  %v1202_v12 = vadd.f32 %v1201_v10, %v1199_v7 }
 0x2ee   : > { %v1146_v13 = vadd.f32 %v1145_v8, %v1144_v6 }
 0x2ef   : > { %v1167_v15 = vsel %vm588_vm5, %v1166_v11, 0.0  ;;  %v1221_v16 = vmul.f32 %v1220_v14, %v1202_v12  ;;  %v1289_v11 = vld [vmem:[#allocation3 + $0x38] sm:$0xff] }
 0x2f0   : > { %v1147_v18 = vrot.slane %v1146_v13, 2  ;;  %v1168_v19 = vrot.slane %v1167_v15, 4  ;;  %v1186_v20 = vpop.permute.xlu1 %1185 }
 0x2f1   : > { %v1188_v22 = vmul.f32 %v1186_v20, %v1180_v4  ;;  %v1224_v23 = vadd.f32 %v1223_v21, %v1221_v16 }
 0x2f2   : > { %v1148_v24 = vadd.f32 %v1147_v18, %v1146_v13  ;;  %v1169_v25 = vadd.f32 %v1168_v19, %v1167_v15  ;;  %v1657_v18 = vpop.eup %1656 }
 0x2f3   : > { %v1189_v27 = vsel %vm588_vm5, %v1188_v22, 0.0  ;;  %v1243_v28 = vmul.f32 %v1242_v26, %v1224_v23 }
 0x2f4   : > { %v1149_v30 = vrot.slane %v1148_v24, 1  ;;  %v1170_v1 = vrot.slane %v1169_v25, 2  ;;  %v1190_v48 = vrot.slane %v1189_v27, 4  ;;  %v1230_v33 = vpop.permute.xlu1 %1229 }
 0x2f5   : > { %v1232_v35 = vmul.f32 %v1230_v33, %v1224_v23  ;;  %v1246_v36 = vadd.f32 %v1245_v34, %v1243_v28 }
 0x2f6   : > { %v1150_v37 = vadd.f32 %v1149_v30, %v1148_v24  ;;  %v1171_v38 = vadd.f32 %v1170_v1, %v1169_v25  ;;  %v1191_v40 = vadd.f32 %v1190_v48, %v1189_v27  ;;  %v1320_v24 = vadd.f32 1.0, %v1657_v18 }
 0x2f7   : > { %v1233_v42 = vsel %vm588_vm5, %v1232_v35, 0.0  ;;  %v1265_v43 = vmul.f32 %v1264_v41, %v1246_v36 }
 0x2f8   : > { %1152 = vst.msk [vmem:[#allocation5] sm:$0x1] %vm1151_vm12, %v1150_v37  ;;  %v1172_v44 = vrot.slane %v1171_v38, 1  ;;  %v1192_v45 = vrot.slane %v1191_v40, 2  ;;  %v1234_v52 = vrot.slane %v1233_v42, 4  ;;  %v1208_v31 = vpop.permute.xlu1 %1207  ;;  %1658 = vrcp.f32 %v1320_v24 }
 0x2f9   : > { %v1210_v32 = vmul.f32 %v1208_v31, %v1202_v12  ;;  %v1268_v54 = vadd.f32 %v1267_v50, %v1265_v43  ;;  %v1500_v37 = vld [vmem:[%s2148_s9] ss:$0 sm:$0xff] }
 0x2fa   : > { %v1173_v46 = vadd.f32 %v1172_v44, %v1171_v38  ;;  %v1193_v47 = vadd.f32 %v1192_v45, %v1191_v40  ;;  %v1235_v49 = vadd.f32 %v1234_v52, %v1233_v42  ;;  %v1315_v40 = vmul.f32 %v1500_v37, %v1891_v39 }
 0x2fb   : > { %v1211_v53 = vsel %vm588_vm5, %v1210_v32, 0.0  ;;  %v1287_v2 = vmul.f32 %v1286_v63, %v1268_v54 }
 0x2fc   : > { %1174 = vst.msk [vmem:[#allocation5 + $0x1] sm:$0x1] %vm1151_vm12, %v1173_v46  ;;  %v1194_v55 = vrot.slane %v1193_v47, 1  ;;  %v1236_v56 = vrot.slane %v1235_v49, 2  ;;  %v1212_v57 = vrot.slane %v1211_v53, 4  ;;  %v1252_v58 = vpop.permute.xlu1 %1251 }
 0x2fd   : > { %v1254_v59 = vmul.f32 %v1252_v58, %v1246_v36  ;;  %v1290_v13 = vadd.f32 %v1289_v11, %v1287_v2 }
 0x2fe   : > { %v1195_v60 = vadd.f32 %v1194_v55, %v1193_v47  ;;  %v1237_v61 = vadd.f32 %v1236_v56, %v1235_v49  ;;  %v1213_v62 = vadd.f32 %v1212_v57, %v1211_v53 }
 0x2ff   : > { %v1255_v0 = vsel %vm588_vm5, %v1254_v59, 0.0 }
 0x300   : > { %1196 = vst.msk [vmem:[#allocation5 + $0x2] sm:$0x1] %vm1151_vm12, %v1195_v60  ;;  %v1238_v3 = vrot.slane %v1237_v61, 1  ;;  %v1214_v4 = vrot.slane %v1213_v62, 2  ;;  %v1256_v5 = vrot.slane %v1255_v0, 4  ;;  %v1274_v6 = vpop.permute.xlu1 %1273 }
 0x301   : > { %v1276_v7 = vmul.f32 %v1274_v6, %v1268_v54 }
 0x302   : > { %v1239_v8 = vadd.f32 %v1238_v3, %v1237_v61  ;;  %v1215_v9 = vadd.f32 %v1214_v4, %v1213_v62  ;;  %v1257_v10 = vadd.f32 %v1256_v5, %v1255_v0 }
 0x303   : > { %v1277_v12 = vsel %vm588_vm5, %v1276_v7, 0.0 }
 0x304   : > { %1240 = vst.msk [vmem:[#allocation5 + $0x4] sm:$0x1] %vm1151_vm12, %v1239_v8  ;;  %v1216_v14 = vrot.slane %v1215_v9, 1  ;;  %v1258_v15 = vrot.slane %v1257_v10, 2  ;;  %v1278_v16 = vrot.slane %v1277_v12, 4  ;;  %v1296_v17 = vpop.permute.xlu1 %1295 }
 0x305   : > { %v1298_v19 = vmul.f32 %v1296_v17, %v1290_v13  ;;  %v1659_v38 = vpop.eup %1658 }
 0x306   : > { %v1217_v20 = vadd.f32 %v1216_v14, %v1215_v9  ;;  %v1259_v21 = vadd.f32 %v1258_v15, %v1257_v10  ;;  %v1279_v22 = vadd.f32 %v1278_v16, %v1277_v12  ;;  %v1323_v42 = vmul.f32 %v1659_v38, %v1987_v51 }
 0x307   : > { %v1299_v23 = vsel %vm588_vm5, %v1298_v19, 0.0 }
 0x308   : > { %1218 = vst.msk [vmem:[#allocation5 + $0x3] sm:$0x1] %vm1151_vm12, %v1217_v20  ;;  %v1260_v25 = vrot.slane %v1259_v21, 1  ;;  %v1280_v26 = vrot.slane %v1279_v22, 2  ;;  %v1300_v27 = vrot.slane %v1299_v23, 4 }
 0x30a   : > { %v1261_v28 = vadd.f32 %v1260_v25, %v1259_v21  ;;  %v1281_v29 = vadd.f32 %v1280_v26, %v1279_v22  ;;  %v1301_v30 = vadd.f32 %v1300_v27, %v1299_v23 }
 0x30c   : > { %1262 = vst.msk [vmem:[#allocation5 + $0x5] sm:$0x1] %vm1151_vm12, %v1261_v28  ;;  %v1282_v1 = vrot.slane %v1281_v29, 1  ;;  %v1302_v48 = vrot.slane %v1301_v30, 2 }
 0x30e   : > { %v1283_v33 = vadd.f32 %v1282_v1, %v1281_v29  ;;  %v1303_v34 = vadd.f32 %v1302_v48, %v1301_v30 }
 0x310   : > { %1284 = vst.msk [vmem:[#allocation5 + $0x6] sm:$0x1] %vm1151_vm12, %v1283_v33  ;;  %v1304_v35 = vrot.slane %v1303_v34, 1 }
 0x312   : > { %v1305_v36 = vadd.f32 %v1304_v35, %v1303_v34 }
 0x314   : > { %1306 = vst.msk [vmem:[#allocation5 + $0x7] sm:$0x1] %vm1151_vm12, %v1305_v36 }
 0x31b   : > { %v1307_v41 = vld [vmem:[#allocation5] sm:$0xff] }
 0x31c   : > { %v1316_v43 = vadd.f32 %v1315_v40, %v1307_v41 }
 0x31e   : > { %v1324_v44 = vmul.f32 %v1323_v42, %v1316_v43 }
 0x320   : > { %v1325_v45 = vpack.c.bf16 %v1324_v44, %v1324_v44 }
 0x322   : > { %1570 = vmatmul.mubr.msk.bf16.vlgmr.msra.gmra.mxu1 %vm588_vm5, %v1325_v45 }
 0x3e2   : > { %v1395_v39 = vpop.f32.mrf.mxu1 }
 0x3e3   : > { %1401 = vst.msk [vmem:[%s377_s29] sm:$0xff] %vm401_vm1, %v1395_v39 }
 0x3e4   : > { %v1571_v51 = vpop.f32.mrf.mxu1 }
 0x3e5   : > { %1673 = shalt.err (!%p1670_p3)
}
 0x3e6   : > { %s1674_s29 = scalar_lea.hbm %s2097_s14, 128  ;;  %s1678_s13 = scalar_lea.hbm %s2150_s11, 256 }
 0x3e7   : > { %p1675_p4 = scmp.ne.s32.totalorder %s2097_s14, %s1674_s29  ;;  %p1679_p9 = scmp.lt.s32.totalorder %s2097_s14, %s2150_s11 }
 0x3e8   : > { %p1680_p10 = scmp.lt.s32.totalorder %s1678_s13, %s1674_s29 }
 0x3e9   : > { %p1676_p7 = pnand %p1675_p4, %p1825_p5 }
 0x3ea   : > { %p1681_p11 = por %p1680_p10, %p1679_p9 }
 0x3eb   : > { %p1677_p8 = pneg %p1676_p7 }
 0x3ed   : > { %p1682_p12 = pnand %p1681_p11, %p1677_p8 }
 0x3ef   : > { %1685 = shalt.err (!%p1682_p12)
}
 0x3f0   : > { %1573 = dma.vmem_to_hbm [thread:$0]  (%p1825_p5), %s2099_s30, 128, %s2097_s14, %s1403_s15   ;;  %v1398_v52 = vpop.f32.mrf.mxu1 }
 0x3f2   : > { %v1572_v31 = vpop.f32.mrf.mxu1 }
 0x3f3 PF: > { %p1579_p13 = scmp.ge.s32.totalorder %s1720_s20, 2  ;;  %s1428_s16 = sand.u32 1, %s1708_s17  }
 0x3f4   : > { %s1429_s0 = scalar_lea.sflag [#allocation7], %s1428_s16 }
 0x3f5   : > { %p1576_p0 = pnand %p1579_p13, %p1829_p6 }
 0x3f7   : > { %p1577_p1 = pneg %p1576_p0 }
 0x3f9   : > { %1703 = dma.done.wait (%p1577_p1), %s1429_s0, 128  }
 0x3fa   : > { %1705 = vsyncadd (%p1577_p1), %s1429_s0, 4294967168  ;;  %p21_p5 = scmp.ge.s32.totalorder %s1812_s23, 4   ;;  %s2159_s17 = smov %s1712_s18 }
 0x3fb   : > { %s2160_s18 = smov %s1716_s19  ;;  %s2161_s19 = smov %s1823_s26 }
 0x3fc   : > { %s2162_s20 = smov %s1812_s23  ;;  %23 = sbr.rel (!%p21_p5) target bundleno = 5 (0x5), region = 120 }
 0x401   :  { %1434 = vsyncpa [#allocation7], 1 }
 0x402   :  { %1436 = vsyncpa [#allocation7 + $0x1], 1 }

</bundles_post_ra>
